<compile_context>
chip_gen: v7x
topology: tpu7x:2x2x1
jax: 0.10.0
libtpu: 0.0.40
codegen_flags: <defaults>
</compile_context>

<pallas_src>
import functools

import jax
import jax.numpy as jnp
from jax import lax
from jax.experimental import pallas as pl
from jax.experimental.pallas import tpu as pltpu


def _round_up(x: int, m: int) -> int:
    return (x + m - 1) // m * m


def _tensorcores_per_chip() -> int:
    """2 on v7x (megacore), 1 on v5e/v6e.  Falls back to 1 (fold batch) on failure."""
    try:
        kind = jax.devices()[0].device_kind.lower()
    except Exception:
        return 1
    return 2 if ("v7" in kind or "7x" in kind) else 1


# ------------------------------------ Pallas kernel -----------------------------------

def attention_kernel(x_ref, wqkv_ref, wout_ref, bout_ref, o_ref, merged_ref,
                     *, heads, dh_pad, scale):
    # x_ref:      (bpb, N, dim)                 current batch block (f32 or bf16)
    # wqkv_ref:   (dim, 3*heads*dh_pad)  bf16   VMEM-resident (constant index_map)
    # wout_ref:   (heads*dh_pad, dim)    bf16   VMEM-resident
    # bout_ref:   (1, dim)               f32    output-projection bias
    # o_ref:      (bpb, N, dim)          f32
    # merged_ref: (bpb*N, heads*dh_pad)  bf16   scratch holding concatenated head outputs
    bpb, n, dim = x_ref.shape
    inner_pad = heads * dh_pad
    rows = bpb * n

    # QKV projection for the whole block at once (bf16 in, f32 accumulate).
    x = x_ref[...].reshape(rows, dim).astype(jnp.bfloat16)
    qkv = jnp.dot(x, wqkv_ref[...],
                  preferred_element_type=jnp.float32).astype(jnp.bfloat16)  # (rows, 3*inner_pad)

    for b in range(bpb):                       # static unroll over batch elements in block
        r0 = b * n
        for h in range(heads):                 # static unroll over heads
            c = h * dh_pad                     # 128-lane aligned offsets (dh_pad % 128 == 0)
            q = qkv[r0:r0 + n, c:c + dh_pad]
            k = qkv[r0:r0 + n, inner_pad + c: inner_pad + c + dh_pad]
            v = qkv[r0:r0 + n, 2 * inner_pad + c: 2 * inner_pad + c + dh_pad]

            # q @ k^T without explicit transpose (contract the last dims of both).
            dots = lax.dot_general(q, k, (((1,), (1,)), ((), ())),
                                   preferred_element_type=jnp.float32) * scale  # (n, n)

            # numerically-stable softmax along the key axis; divide -> EUP reciprocal
            dots = dots - jnp.max(dots, axis=-1, keepdims=True)
            p = jnp.exp(dots)
            inv = pl.reciprocal(jnp.sum(p, axis=-1, keepdims=True), approx=True)
            attn = (p * inv).astype(jnp.bfloat16)

            head_out = jnp.dot(attn, v, preferred_element_type=jnp.float32)   # (n, dh_pad)
            merged_ref[r0:r0 + n, c:c + dh_pad] = head_out.astype(jnp.bfloat16)

    # Output projection over all heads at once + bias.
    out = jnp.dot(merged_ref[...], wout_ref[...],
                  preferred_element_type=jnp.float32)                         # (rows, dim)
    out = out + bout_ref[...]
    o_ref[...] = out.reshape(bpb, n, dim).astype(o_ref.dtype)


# ------------------------------ one-time weight preparation ----------------------------

def prepare_attention_weights(w_qkv, w_out, b_out, *, heads, dim_head):
    """Host-side, once per module: pad dim_head to 128 lanes and cast weights to bf16.

    Padded q/k weight columns are zero (contribute 0 to q.k^T); padded v columns are zero
    and the matching w_out rows are zero, so the result is exactly the unpadded math.
    """
    dim = w_qkv.shape[0]
    inner = heads * dim_head
    assert w_qkv.shape == (dim, 3 * inner)
    assert w_out.shape == (inner, dim)
    assert b_out.shape == (dim,)

    dh_pad = max(_round_up(dim_head, 128), 128)
    pad = dh_pad - dim_head

    wq, wk, wv = jnp.split(w_qkv.astype(jnp.float32), 3, axis=1)

    def pad_heads(w):  # (dim, heads*dim_head) -> (dim, heads*dh_pad)
        w = w.reshape(dim, heads, dim_head)
        w = jnp.pad(w, ((0, 0), (0, 0), (0, pad)))
        return w.reshape(dim, heads * dh_pad)

    w_qkv_p = jnp.concatenate([pad_heads(wq), pad_heads(wk), pad_heads(wv)],
                              axis=1).astype(jnp.bfloat16)          # (dim, 3*heads*dh_pad)

    w_out_p = jnp.pad(w_out.astype(jnp.float32).reshape(heads, dim_head, dim),
                      ((0, 0), (0, pad), (0, 0)))
    w_out_p = w_out_p.reshape(heads * dh_pad, dim).astype(jnp.bfloat16)  # (heads*dh_pad, dim)

    b_out_p = b_out.reshape(1, dim).astype(jnp.float32)
    return w_qkv_p, w_out_p, b_out_p


# -------------------------------------- forward ----------------------------------------

def attention_forward(x, w_qkv_p, w_out_p, b_out_p, *, heads, dim_head):
    """x: (B, N, dim); weights from prepare_attention_weights. Returns (B, N, dim) f32."""
    B, N, dim = x.shape
    dh_pad = w_qkv_p.shape[1] // (3 * heads)
    inner_pad = heads * dh_pad
    scale = float(dim_head) ** -0.5

    # v5e/v6e: single TensorCore -> fold the whole batch into one grid step (no per-step
    # grid overhead, fatter M for the MXU).  v7x: 2 TCs -> keep B as a parallel grid axis.
    bpb = 1 if (_tensorcores_per_chip() >= 2 and B >= 2) else B
    grid = (B // bpb,)

    kernel = functools.partial(attention_kernel,
                               heads=heads, dh_pad=dh_pad, scale=scale)

    return pl.pallas_call(
        kernel,
        out_shape=jax.ShapeDtypeStruct((B, N, dim), jnp.float32),
        grid_spec=pltpu.PrefetchScalarGridSpec(
            num_scalar_prefetch=0,
            grid=grid,
            in_specs=[
                pl.BlockSpec((bpb, N, dim), lambda b: (b, 0, 0)),
                pl.BlockSpec((dim, 3 * inner_pad), lambda b: (0, 0)),   # VMEM-resident
                pl.BlockSpec((inner_pad, dim), lambda b: (0, 0)),       # VMEM-resident
                pl.BlockSpec((1, dim), lambda b: (0, 0)),               # bias
            ],
            out_specs=pl.BlockSpec((bpb, N, dim), lambda b: (b, 0, 0)),
            scratch_shapes=[pltpu.VMEM((bpb * N, inner_pad), jnp.bfloat16)],
        ),
        compiler_params=pltpu.CompilerParams(dimension_semantics=("parallel",)),
    )(x, w_qkv_p, w_out_p, b_out_p)


# ---------------------------------------- main -----------------------------------------

if __name__ == "__main__":
    B, N, dim = 2, 8, 32          # batch=2, seq=8, hidden=32
    heads, dim_head = 6, 64       # module defaults
    inner = heads * dim_head

    key = jax.random.PRNGKey(0)
    kx, kq, ko, kb = jax.random.split(key, 4)
    x = jax.random.normal(kx, (B, N, dim), jnp.float32)
    w_qkv = jax.random.normal(kq, (dim, 3 * inner), jnp.float32) * (dim ** -0.5)
    w_out = jax.random.normal(ko, (inner, dim), jnp.float32) * (inner ** -0.5)
    b_out = jax.random.normal(kb, (dim,), jnp.float32) * 0.1

    # one-time weight preparation (module params), outside the hot path
    w_qkv_p, w_out_p, b_out_p = prepare_attention_weights(
        w_qkv, w_out, b_out, heads=heads, dim_head=dim_head)

    fwd = jax.jit(functools.partial(attention_forward, heads=heads, dim_head=dim_head))
    out = jax.block_until_ready(fwd(x, w_qkv_p, w_out_p, b_out_p))

    # pure-JAX f32 reference (matches the PyTorch forward, incl. to_out bias, dropout=0)
    scale = dim_head ** -0.5
    qkv = x @ w_qkv
    q, k, v = jnp.split(qkv, 3, axis=-1)
    to_heads = lambda t: t.reshape(B, N, heads, dim_head).transpose(0, 2, 1, 3)
    qh, kh, vh = map(to_heads, (q, k, v))
    dots = jnp.einsum('bhid,bhjd->bhij', qh, kh) * scale
    attn_w = jax.nn.softmax(dots, axis=-1)
    ref = (jnp.einsum('bhij,bhjd->bhid', attn_w, vh)
           .transpose(0, 2, 1, 3).reshape(B, N, inner)) @ w_out + b_out

    assert out.shape == (B, N, dim)
    max_err = float(jnp.max(jnp.abs(out - ref)))
    # bf16 MXU inputs + approx reciprocal -> bf16-level tolerance
    assert jnp.allclose(out, ref, atol=5e-2, rtol=5e-2), f"mismatch vs reference: {max_err}"

    print("KERNEL_OK")
</pallas_src>

<mosaic_0001>
module attributes {stable_mosaic.version = 11 : i64} {
  func.func @attention_kernel(%arg0: i32, %arg1: memref<2x8x32xf32, #tpu.memory_space<vmem>>, %arg2: memref<32x2304xbf16, #tpu.memory_space<vmem>>, %arg3: memref<768x32xbf16, #tpu.memory_space<vmem>>, %arg4: memref<1x32xf32, #tpu.memory_space<vmem>>, %arg5: memref<2x8x32xf32, #tpu.memory_space<vmem>>, %arg6: memref<16x768xbf16, #tpu.memory_space<vmem>>) attributes {dimension_semantics = [#tpu.dimension_semantics<parallel>], iteration_bounds = array<i64: 1>, scalar_prefetch = 0 : i64, scratch_operands = 1 : i64, tpu.core_type = #tpu.core_type<tc>, window_params = [{transform_indices = @transform_0, window_bounds = array<i64: 2, 8, 32>}, {pipeline_mode = #tpu.pipeline_mode<synchronous>, transform_indices = @transform_1, window_bounds = array<i64: 32, 2304>}, {pipeline_mode = #tpu.pipeline_mode<synchronous>, transform_indices = @transform_2, window_bounds = array<i64: 768, 32>}, {pipeline_mode = #tpu.pipeline_mode<synchronous>, transform_indices = @transform_3, window_bounds = array<i64: 1, 32>}, {transform_indices = @transform_4, window_bounds = array<i64: 2, 8, 32>}]} {
    %c0 = arith.constant 0 : index
    %c0_0 = arith.constant 0 : index
    %c0_1 = arith.constant 0 : index
    %0 = vector.load %arg1[%c0, %c0_0, %c0_1] : memref<2x8x32xf32, #tpu.memory_space<vmem>>, vector<2x8x32xf32>
    %1 = vector.shape_cast %0 : vector<2x8x32xf32> to vector<16x32xf32>
    %2 = arith.truncf %1 : vector<16x32xf32> to vector<16x32xbf16>
    %c0_2 = arith.constant 0 : index
    %c0_3 = arith.constant 0 : index
    %3 = vector.load %arg2[%c0_2, %c0_3] : memref<32x2304xbf16, #tpu.memory_space<vmem>>, vector<32x2304xbf16>
    %cst = arith.constant dense<0.000000e+00> : vector<16x2304xf32>
    %4 = tpu.matmul %2, %3, %cst {dimension_numbers = #tpu.dot_dimension_numbers<[1], [0], [0], [1], [0, 0, 1, 1], [], []>} : vector<16x32xbf16>, vector<32x2304xbf16>, vector<16x2304xf32> -> vector<16x2304xf32>
    %5 = arith.truncf %4 : vector<16x2304xf32> to vector<16x2304xbf16>
    %6 = vector.extract_strided_slice %5 {offsets = [0, 0], sizes = [8, 128], strides = [1, 1]} : vector<16x2304xbf16> to vector<8x128xbf16>
    %7 = vector.extract_strided_slice %5 {offsets = [0, 768], sizes = [8, 128], strides = [1, 1]} : vector<16x2304xbf16> to vector<8x128xbf16>
    %8 = vector.extract_strided_slice %5 {offsets = [0, 1536], sizes = [8, 128], strides = [1, 1]} : vector<16x2304xbf16> to vector<8x128xbf16>
    %cst_4 = arith.constant dense<0.000000e+00> : vector<8x8xf32>
    %9 = tpu.matmul %6, %7, %cst_4 {dimension_numbers = #tpu.dot_dimension_numbers<[1], [1], [0], [0], [0, 0, 1, 0], [], []>} : vector<8x128xbf16>, vector<8x128xbf16>, vector<8x8xf32> -> vector<8x8xf32>
    %cst_5 = arith.constant 1.250000e-01 : f32
    %10 = vector.broadcast %cst_5 : f32 to vector<8x8xf32>
    %11 = arith.mulf %9, %10 : vector<8x8xf32>
    %cst_6 = arith.constant dense<0xFF800000> : vector<8xf32>
    %12 = vector.multi_reduction <maximumf>, %11, %cst_6 [1] : vector<8x8xf32> to vector<8xf32>
    %13 = vector.shape_cast %12 : vector<8xf32> to vector<8x1xf32>
    %14 = vector.broadcast %13 : vector<8x1xf32> to vector<8x8xf32>
    %15 = arith.subf %11, %14 : vector<8x8xf32>
    %16 = math.exp %15 : vector<8x8xf32>
    %cst_7 = arith.constant dense<0.000000e+00> : vector<8xf32>
    %17 = vector.multi_reduction <add>, %16, %cst_7 [1] : vector<8x8xf32> to vector<8xf32>
    %18 = vector.shape_cast %17 : vector<8xf32> to vector<8x1xf32>
    %19 = tpu.reciprocal %18 {approx = true} : vector<8x1xf32> -> vector<8x1xf32>
    %20 = vector.broadcast %19 : vector<8x1xf32> to vector<8x8xf32>
    %21 = arith.mulf %16, %20 : vector<8x8xf32>
    %22 = arith.truncf %21 : vector<8x8xf32> to vector<8x8xbf16>
    %cst_8 = arith.constant dense<0.000000e+00> : vector<8x128xf32>
    %23 = tpu.matmul %22, %8, %cst_8 {dimension_numbers = #tpu.dot_dimension_numbers<[1], [0], [0], [1], [0, 0, 1, 1], [], []>} : vector<8x8xbf16>, vector<8x128xbf16>, vector<8x128xf32> -> vector<8x128xf32>
    %24 = arith.truncf %23 : vector<8x128xf32> to vector<8x128xbf16>
    %c0_9 = arith.constant 0 : index
    %c0_10 = arith.constant 0 : index
    %25 = vector.load %arg6[%c0_9, %c0_10] : memref<16x768xbf16, #tpu.memory_space<vmem>>, vector<8x128xbf16>
    tpu.vector_store %arg6[%c0_9, %c0_10], %24 {strides = array<i32>} : memref<16x768xbf16, #tpu.memory_space<vmem>>, vector<8x128xbf16>,
    %26 = vector.extract_strided_slice %5 {offsets = [0, 128], sizes = [8, 128], strides = [1, 1]} : vector<16x2304xbf16> to vector<8x128xbf16>
    %27 = vector.extract_strided_slice %5 {offsets = [0, 896], sizes = [8, 128], strides = [1, 1]} : vector<16x2304xbf16> to vector<8x128xbf16>
    %28 = vector.extract_strided_slice %5 {offsets = [0, 1664], sizes = [8, 128], strides = [1, 1]} : vector<16x2304xbf16> to vector<8x128xbf16>
    %cst_11 = arith.constant dense<0.000000e+00> : vector<8x8xf32>
    %29 = tpu.matmul %26, %27, %cst_11 {dimension_numbers = #tpu.dot_dimension_numbers<[1], [1], [0], [0], [0, 0, 1, 0], [], []>} : vector<8x128xbf16>, vector<8x128xbf16>, vector<8x8xf32> -> vector<8x8xf32>
    %cst_12 = arith.constant 1.250000e-01 : f32
    %30 = vector.broadcast %cst_12 : f32 to vector<8x8xf32>
    %31 = arith.mulf %29, %30 : vector<8x8xf32>
    %cst_13 = arith.constant dense<0xFF800000> : vector<8xf32>
    %32 = vector.multi_reduction <maximumf>, %31, %cst_13 [1] : vector<8x8xf32> to vector<8xf32>
    %33 = vector.shape_cast %32 : vector<8xf32> to vector<8x1xf32>
    %34 = vector.broadcast %33 : vector<8x1xf32> to vector<8x8xf32>
    %35 = arith.subf %31, %34 : vector<8x8xf32>
    %36 = math.exp %35 : vector<8x8xf32>
    %cst_14 = arith.constant dense<0.000000e+00> : vector<8xf32>
    %37 = vector.multi_reduction <add>, %36, %cst_14 [1] : vector<8x8xf32> to vector<8xf32>
    %38 = vector.shape_cast %37 : vector<8xf32> to vector<8x1xf32>
    %39 = tpu.reciprocal %38 {approx = true} : vector<8x1xf32> -> vector<8x1xf32>
    %40 = vector.broadcast %39 : vector<8x1xf32> to vector<8x8xf32>
    %41 = arith.mulf %36, %40 : vector<8x8xf32>
    %42 = arith.truncf %41 : vector<8x8xf32> to vector<8x8xbf16>
    %cst_15 = arith.constant dense<0.000000e+00> : vector<8x128xf32>
    %43 = tpu.matmul %42, %28, %cst_15 {dimension_numbers = #tpu.dot_dimension_numbers<[1], [0], [0], [1], [0, 0, 1, 1], [], []>} : vector<8x8xbf16>, vector<8x128xbf16>, vector<8x128xf32> -> vector<8x128xf32>
    %44 = arith.truncf %43 : vector<8x128xf32> to vector<8x128xbf16>
    %c0_16 = arith.constant 0 : index
    %c128 = arith.constant 128 : index
    %45 = vector.load %arg6[%c0_16, %c128] : memref<16x768xbf16, #tpu.memory_space<vmem>>, vector<8x128xbf16>
    tpu.vector_store %arg6[%c0_16, %c128], %44 {strides = array<i32>} : memref<16x768xbf16, #tpu.memory_space<vmem>>, vector<8x128xbf16>,
    %46 = vector.extract_strided_slice %5 {offsets = [0, 256], sizes = [8, 128], strides = [1, 1]} : vector<16x2304xbf16> to vector<8x128xbf16>
    %47 = vector.extract_strided_slice %5 {offsets = [0, 1024], sizes = [8, 128], strides = [1, 1]} : vector<16x2304xbf16> to vector<8x128xbf16>
    %48 = vector.extract_strided_slice %5 {offsets = [0, 1792], sizes = [8, 128], strides = [1, 1]} : vector<16x2304xbf16> to vector<8x128xbf16>
    %cst_17 = arith.constant dense<0.000000e+00> : vector<8x8xf32>
    %49 = tpu.matmul %46, %47, %cst_17 {dimension_numbers = #tpu.dot_dimension_numbers<[1], [1], [0], [0], [0, 0, 1, 0], [], []>} : vector<8x128xbf16>, vector<8x128xbf16>, vector<8x8xf32> -> vector<8x8xf32>
    %cst_18 = arith.constant 1.250000e-01 : f32
    %50 = vector.broadcast %cst_18 : f32 to vector<8x8xf32>
    %51 = arith.mulf %49, %50 : vector<8x8xf32>
    %cst_19 = arith.constant dense<0xFF800000> : vector<8xf32>
    %52 = vector.multi_reduction <maximumf>, %51, %cst_19 [1] : vector<8x8xf32> to vector<8xf32>
    %53 = vector.shape_cast %52 : vector<8xf32> to vector<8x1xf32>
    %54 = vector.broadcast %53 : vector<8x1xf32> to vector<8x8xf32>
    %55 = arith.subf %51, %54 : vector<8x8xf32>
    %56 = math.exp %55 : vector<8x8xf32>
    %cst_20 = arith.constant dense<0.000000e+00> : vector<8xf32>
    %57 = vector.multi_reduction <add>, %56, %cst_20 [1] : vector<8x8xf32> to vector<8xf32>
    %58 = vector.shape_cast %57 : vector<8xf32> to vector<8x1xf32>
    %59 = tpu.reciprocal %58 {approx = true} : vector<8x1xf32> -> vector<8x1xf32>
    %60 = vector.broadcast %59 : vector<8x1xf32> to vector<8x8xf32>
    %61 = arith.mulf %56, %60 : vector<8x8xf32>
    %62 = arith.truncf %61 : vector<8x8xf32> to vector<8x8xbf16>
    %cst_21 = arith.constant dense<0.000000e+00> : vector<8x128xf32>
    %63 = tpu.matmul %62, %48, %cst_21 {dimension_numbers = #tpu.dot_dimension_numbers<[1], [0], [0], [1], [0, 0, 1, 1], [], []>} : vector<8x8xbf16>, vector<8x128xbf16>, vector<8x128xf32> -> vector<8x128xf32>
    %64 = arith.truncf %63 : vector<8x128xf32> to vector<8x128xbf16>
    %c0_22 = arith.constant 0 : index
    %c256 = arith.constant 256 : index
    %65 = vector.load %arg6[%c0_22, %c256] : memref<16x768xbf16, #tpu.memory_space<vmem>>, vector<8x128xbf16>
    tpu.vector_store %arg6[%c0_22, %c256], %64 {strides = array<i32>} : memref<16x768xbf16, #tpu.memory_space<vmem>>, vector<8x128xbf16>,
    %66 = vector.extract_strided_slice %5 {offsets = [0, 384], sizes = [8, 128], strides = [1, 1]} : vector<16x2304xbf16> to vector<8x128xbf16>
    %67 = vector.extract_strided_slice %5 {offsets = [0, 1152], sizes = [8, 128], strides = [1, 1]} : vector<16x2304xbf16> to vector<8x128xbf16>
    %68 = vector.extract_strided_slice %5 {offsets = [0, 1920], sizes = [8, 128], strides = [1, 1]} : vector<16x2304xbf16> to vector<8x128xbf16>
    %cst_23 = arith.constant dense<0.000000e+00> : vector<8x8xf32>
    %69 = tpu.matmul %66, %67, %cst_23 {dimension_numbers = #tpu.dot_dimension_numbers<[1], [1], [0], [0], [0, 0, 1, 0], [], []>} : vector<8x128xbf16>, vector<8x128xbf16>, vector<8x8xf32> -> vector<8x8xf32>
    %cst_24 = arith.constant 1.250000e-01 : f32
    %70 = vector.broadcast %cst_24 : f32 to vector<8x8xf32>
    %71 = arith.mulf %69, %70 : vector<8x8xf32>
    %cst_25 = arith.constant dense<0xFF800000> : vector<8xf32>
    %72 = vector.multi_reduction <maximumf>, %71, %cst_25 [1] : vector<8x8xf32> to vector<8xf32>
    %73 = vector.shape_cast %72 : vector<8xf32> to vector<8x1xf32>
    %74 = vector.broadcast %73 : vector<8x1xf32> to vector<8x8xf32>
    %75 = arith.subf %71, %74 : vector<8x8xf32>
    %76 = math.exp %75 : vector<8x8xf32>
    %cst_26 = arith.constant dense<0.000000e+00> : vector<8xf32>
    %77 = vector.multi_reduction <add>, %76, %cst_26 [1] : vector<8x8xf32> to vector<8xf32>
    %78 = vector.shape_cast %77 : vector<8xf32> to vector<8x1xf32>
    %79 = tpu.reciprocal %78 {approx = true} : vector<8x1xf32> -> vector<8x1xf32>
    %80 = vector.broadcast %79 : vector<8x1xf32> to vector<8x8xf32>
    %81 = arith.mulf %76, %80 : vector<8x8xf32>
    %82 = arith.truncf %81 : vector<8x8xf32> to vector<8x8xbf16>
    %cst_27 = arith.constant dense<0.000000e+00> : vector<8x128xf32>
    %83 = tpu.matmul %82, %68, %cst_27 {dimension_numbers = #tpu.dot_dimension_numbers<[1], [0], [0], [1], [0, 0, 1, 1], [], []>} : vector<8x8xbf16>, vector<8x128xbf16>, vector<8x128xf32> -> vector<8x128xf32>
    %84 = arith.truncf %83 : vector<8x128xf32> to vector<8x128xbf16>
    %c0_28 = arith.constant 0 : index
    %c384 = arith.constant 384 : index
    %85 = vector.load %arg6[%c0_28, %c384] : memref<16x768xbf16, #tpu.memory_space<vmem>>, vector<8x128xbf16>
    tpu.vector_store %arg6[%c0_28, %c384], %84 {strides = array<i32>} : memref<16x768xbf16, #tpu.memory_space<vmem>>, vector<8x128xbf16>,
    %86 = vector.extract_strided_slice %5 {offsets = [0, 512], sizes = [8, 128], strides = [1, 1]} : vector<16x2304xbf16> to vector<8x128xbf16>
    %87 = vector.extract_strided_slice %5 {offsets = [0, 1280], sizes = [8, 128], strides = [1, 1]} : vector<16x2304xbf16> to vector<8x128xbf16>
    %88 = vector.extract_strided_slice %5 {offsets = [0, 2048], sizes = [8, 128], strides = [1, 1]} : vector<16x2304xbf16> to vector<8x128xbf16>
    %cst_29 = arith.constant dense<0.000000e+00> : vector<8x8xf32>
    %89 = tpu.matmul %86, %87, %cst_29 {dimension_numbers = #tpu.dot_dimension_numbers<[1], [1], [0], [0], [0, 0, 1, 0], [], []>} : vector<8x128xbf16>, vector<8x128xbf16>, vector<8x8xf32> -> vector<8x8xf32>
    %cst_30 = arith.constant 1.250000e-01 : f32
    %90 = vector.broadcast %cst_30 : f32 to vector<8x8xf32>
    %91 = arith.mulf %89, %90 : vector<8x8xf32>
    %cst_31 = arith.constant dense<0xFF800000> : vector<8xf32>
    %92 = vector.multi_reduction <maximumf>, %91, %cst_31 [1] : vector<8x8xf32> to vector<8xf32>
    %93 = vector.shape_cast %92 : vector<8xf32> to vector<8x1xf32>
    %94 = vector.broadcast %93 : vector<8x1xf32> to vector<8x8xf32>
    %95 = arith.subf %91, %94 : vector<8x8xf32>
    %96 = math.exp %95 : vector<8x8xf32>
    %cst_32 = arith.constant dense<0.000000e+00> : vector<8xf32>
    %97 = vector.multi_reduction <add>, %96, %cst_32 [1] : vector<8x8xf32> to vector<8xf32>
    %98 = vector.shape_cast %97 : vector<8xf32> to vector<8x1xf32>
    %99 = tpu.reciprocal %98 {approx = true} : vector<8x1xf32> -> vector<8x1xf32>
    %100 = vector.broadcast %99 : vector<8x1xf32> to vector<8x8xf32>
    %101 = arith.mulf %96, %100 : vector<8x8xf32>
    %102 = arith.truncf %101 : vector<8x8xf32> to vector<8x8xbf16>
    %cst_33 = arith.constant dense<0.000000e+00> : vector<8x128xf32>
    %103 = tpu.matmul %102, %88, %cst_33 {dimension_numbers = #tpu.dot_dimension_numbers<[1], [0], [0], [1], [0, 0, 1, 1], [], []>} : vector<8x8xbf16>, vector<8x128xbf16>, vector<8x128xf32> -> vector<8x128xf32>
    %104 = arith.truncf %103 : vector<8x128xf32> to vector<8x128xbf16>
    %c0_34 = arith.constant 0 : index
    %c512 = arith.constant 512 : index
    %105 = vector.load %arg6[%c0_34, %c512] : memref<16x768xbf16, #tpu.memory_space<vmem>>, vector<8x128xbf16>
    tpu.vector_store %arg6[%c0_34, %c512], %104 {strides = array<i32>} : memref<16x768xbf16, #tpu.memory_space<vmem>>, vector<8x128xbf16>,
    %106 = vector.extract_strided_slice %5 {offsets = [0, 640], sizes = [8, 128], strides = [1, 1]} : vector<16x2304xbf16> to vector<8x128xbf16>
    %107 = vector.extract_strided_slice %5 {offsets = [0, 1408], sizes = [8, 128], strides = [1, 1]} : vector<16x2304xbf16> to vector<8x128xbf16>
    %108 = vector.extract_strided_slice %5 {offsets = [0, 2176], sizes = [8, 128], strides = [1, 1]} : vector<16x2304xbf16> to vector<8x128xbf16>
    %cst_35 = arith.constant dense<0.000000e+00> : vector<8x8xf32>
    %109 = tpu.matmul %106, %107, %cst_35 {dimension_numbers = #tpu.dot_dimension_numbers<[1], [1], [0], [0], [0, 0, 1, 0], [], []>} : vector<8x128xbf16>, vector<8x128xbf16>, vector<8x8xf32> -> vector<8x8xf32>
    %cst_36 = arith.constant 1.250000e-01 : f32
    %110 = vector.broadcast %cst_36 : f32 to vector<8x8xf32>
    %111 = arith.mulf %109, %110 : vector<8x8xf32>
    %cst_37 = arith.constant dense<0xFF800000> : vector<8xf32>
    %112 = vector.multi_reduction <maximumf>, %111, %cst_37 [1] : vector<8x8xf32> to vector<8xf32>
    %113 = vector.shape_cast %112 : vector<8xf32> to vector<8x1xf32>
    %114 = vector.broadcast %113 : vector<8x1xf32> to vector<8x8xf32>
    %115 = arith.subf %111, %114 : vector<8x8xf32>
    %116 = math.exp %115 : vector<8x8xf32>
    %cst_38 = arith.constant dense<0.000000e+00> : vector<8xf32>
    %117 = vector.multi_reduction <add>, %116, %cst_38 [1] : vector<8x8xf32> to vector<8xf32>
    %118 = vector.shape_cast %117 : vector<8xf32> to vector<8x1xf32>
    %119 = tpu.reciprocal %118 {approx = true} : vector<8x1xf32> -> vector<8x1xf32>
    %120 = vector.broadcast %119 : vector<8x1xf32> to vector<8x8xf32>
    %121 = arith.mulf %116, %120 : vector<8x8xf32>
    %122 = arith.truncf %121 : vector<8x8xf32> to vector<8x8xbf16>
    %cst_39 = arith.constant dense<0.000000e+00> : vector<8x128xf32>
    %123 = tpu.matmul %122, %108, %cst_39 {dimension_numbers = #tpu.dot_dimension_numbers<[1], [0], [0], [1], [0, 0, 1, 1], [], []>} : vector<8x8xbf16>, vector<8x128xbf16>, vector<8x128xf32> -> vector<8x128xf32>
    %124 = arith.truncf %123 : vector<8x128xf32> to vector<8x128xbf16>
    %c0_40 = arith.constant 0 : index
    %c640 = arith.constant 640 : index
    %125 = vector.load %arg6[%c0_40, %c640] : memref<16x768xbf16, #tpu.memory_space<vmem>>, vector<8x128xbf16>
    tpu.vector_store %arg6[%c0_40, %c640], %124 {strides = array<i32>} : memref<16x768xbf16, #tpu.memory_space<vmem>>, vector<8x128xbf16>,
    %126 = vector.extract_strided_slice %5 {offsets = [8, 0], sizes = [8, 128], strides = [1, 1]} : vector<16x2304xbf16> to vector<8x128xbf16>
    %127 = vector.extract_strided_slice %5 {offsets = [8, 768], sizes = [8, 128], strides = [1, 1]} : vector<16x2304xbf16> to vector<8x128xbf16>
    %128 = vector.extract_strided_slice %5 {offsets = [8, 1536], sizes = [8, 128], strides = [1, 1]} : vector<16x2304xbf16> to vector<8x128xbf16>
    %cst_41 = arith.constant dense<0.000000e+00> : vector<8x8xf32>
    %129 = tpu.matmul %126, %127, %cst_41 {dimension_numbers = #tpu.dot_dimension_numbers<[1], [1], [0], [0], [0, 0, 1, 0], [], []>} : vector<8x128xbf16>, vector<8x128xbf16>, vector<8x8xf32> -> vector<8x8xf32>
    %cst_42 = arith.constant 1.250000e-01 : f32
    %130 = vector.broadcast %cst_42 : f32 to vector<8x8xf32>
    %131 = arith.mulf %129, %130 : vector<8x8xf32>
    %cst_43 = arith.constant dense<0xFF800000> : vector<8xf32>
    %132 = vector.multi_reduction <maximumf>, %131, %cst_43 [1] : vector<8x8xf32> to vector<8xf32>
    %133 = vector.shape_cast %132 : vector<8xf32> to vector<8x1xf32>
    %134 = vector.broadcast %133 : vector<8x1xf32> to vector<8x8xf32>
    %135 = arith.subf %131, %134 : vector<8x8xf32>
    %136 = math.exp %135 : vector<8x8xf32>
    %cst_44 = arith.constant dense<0.000000e+00> : vector<8xf32>
    %137 = vector.multi_reduction <add>, %136, %cst_44 [1] : vector<8x8xf32> to vector<8xf32>
    %138 = vector.shape_cast %137 : vector<8xf32> to vector<8x1xf32>
    %139 = tpu.reciprocal %138 {approx = true} : vector<8x1xf32> -> vector<8x1xf32>
    %140 = vector.broadcast %139 : vector<8x1xf32> to vector<8x8xf32>
    %141 = arith.mulf %136, %140 : vector<8x8xf32>
    %142 = arith.truncf %141 : vector<8x8xf32> to vector<8x8xbf16>
    %cst_45 = arith.constant dense<0.000000e+00> : vector<8x128xf32>
    %143 = tpu.matmul %142, %128, %cst_45 {dimension_numbers = #tpu.dot_dimension_numbers<[1], [0], [0], [1], [0, 0, 1, 1], [], []>} : vector<8x8xbf16>, vector<8x128xbf16>, vector<8x128xf32> -> vector<8x128xf32>
    %144 = arith.truncf %143 : vector<8x128xf32> to vector<8x128xbf16>
    %c8 = arith.constant 8 : index
    %c0_46 = arith.constant 0 : index
    %145 = vector.load %arg6[%c8, %c0_46] : memref<16x768xbf16, #tpu.memory_space<vmem>>, vector<8x128xbf16>
    tpu.vector_store %arg6[%c8, %c0_46], %144 {strides = array<i32>} : memref<16x768xbf16, #tpu.memory_space<vmem>>, vector<8x128xbf16>,
    %146 = vector.extract_strided_slice %5 {offsets = [8, 128], sizes = [8, 128], strides = [1, 1]} : vector<16x2304xbf16> to vector<8x128xbf16>
    %147 = vector.extract_strided_slice %5 {offsets = [8, 896], sizes = [8, 128], strides = [1, 1]} : vector<16x2304xbf16> to vector<8x128xbf16>
    %148 = vector.extract_strided_slice %5 {offsets = [8, 1664], sizes = [8, 128], strides = [1, 1]} : vector<16x2304xbf16> to vector<8x128xbf16>
    %cst_47 = arith.constant dense<0.000000e+00> : vector<8x8xf32>
    %149 = tpu.matmul %146, %147, %cst_47 {dimension_numbers = #tpu.dot_dimension_numbers<[1], [1], [0], [0], [0, 0, 1, 0], [], []>} : vector<8x128xbf16>, vector<8x128xbf16>, vector<8x8xf32> -> vector<8x8xf32>
    %cst_48 = arith.constant 1.250000e-01 : f32
    %150 = vector.broadcast %cst_48 : f32 to vector<8x8xf32>
    %151 = arith.mulf %149, %150 : vector<8x8xf32>
    %cst_49 = arith.constant dense<0xFF800000> : vector<8xf32>
    %152 = vector.multi_reduction <maximumf>, %151, %cst_49 [1] : vector<8x8xf32> to vector<8xf32>
    %153 = vector.shape_cast %152 : vector<8xf32> to vector<8x1xf32>
    %154 = vector.broadcast %153 : vector<8x1xf32> to vector<8x8xf32>
    %155 = arith.subf %151, %154 : vector<8x8xf32>
    %156 = math.exp %155 : vector<8x8xf32>
    %cst_50 = arith.constant dense<0.000000e+00> : vector<8xf32>
    %157 = vector.multi_reduction <add>, %156, %cst_50 [1] : vector<8x8xf32> to vector<8xf32>
    %158 = vector.shape_cast %157 : vector<8xf32> to vector<8x1xf32>
    %159 = tpu.reciprocal %158 {approx = true} : vector<8x1xf32> -> vector<8x1xf32>
    %160 = vector.broadcast %159 : vector<8x1xf32> to vector<8x8xf32>
    %161 = arith.mulf %156, %160 : vector<8x8xf32>
    %162 = arith.truncf %161 : vector<8x8xf32> to vector<8x8xbf16>
    %cst_51 = arith.constant dense<0.000000e+00> : vector<8x128xf32>
    %163 = tpu.matmul %162, %148, %cst_51 {dimension_numbers = #tpu.dot_dimension_numbers<[1], [0], [0], [1], [0, 0, 1, 1], [], []>} : vector<8x8xbf16>, vector<8x128xbf16>, vector<8x128xf32> -> vector<8x128xf32>
    %164 = arith.truncf %163 : vector<8x128xf32> to vector<8x128xbf16>
    %c8_52 = arith.constant 8 : index
    %c128_53 = arith.constant 128 : index
    %165 = vector.load %arg6[%c8_52, %c128_53] : memref<16x768xbf16, #tpu.memory_space<vmem>>, vector<8x128xbf16>
    tpu.vector_store %arg6[%c8_52, %c128_53], %164 {strides = array<i32>} : memref<16x768xbf16, #tpu.memory_space<vmem>>, vector<8x128xbf16>,
    %166 = vector.extract_strided_slice %5 {offsets = [8, 256], sizes = [8, 128], strides = [1, 1]} : vector<16x2304xbf16> to vector<8x128xbf16>
    %167 = vector.extract_strided_slice %5 {offsets = [8, 1024], sizes = [8, 128], strides = [1, 1]} : vector<16x2304xbf16> to vector<8x128xbf16>
    %168 = vector.extract_strided_slice %5 {offsets = [8, 1792], sizes = [8, 128], strides = [1, 1]} : vector<16x2304xbf16> to vector<8x128xbf16>
    %cst_54 = arith.constant dense<0.000000e+00> : vector<8x8xf32>
    %169 = tpu.matmul %166, %167, %cst_54 {dimension_numbers = #tpu.dot_dimension_numbers<[1], [1], [0], [0], [0, 0, 1, 0], [], []>} : vector<8x128xbf16>, vector<8x128xbf16>, vector<8x8xf32> -> vector<8x8xf32>
    %cst_55 = arith.constant 1.250000e-01 : f32
    %170 = vector.broadcast %cst_55 : f32 to vector<8x8xf32>
    %171 = arith.mulf %169, %170 : vector<8x8xf32>
    %cst_56 = arith.constant dense<0xFF800000> : vector<8xf32>
    %172 = vector.multi_reduction <maximumf>, %171, %cst_56 [1] : vector<8x8xf32> to vector<8xf32>
    %173 = vector.shape_cast %172 : vector<8xf32> to vector<8x1xf32>
    %174 = vector.broadcast %173 : vector<8x1xf32> to vector<8x8xf32>
    %175 = arith.subf %171, %174 : vector<8x8xf32>
    %176 = math.exp %175 : vector<8x8xf32>
    %cst_57 = arith.constant dense<0.000000e+00> : vector<8xf32>
    %177 = vector.multi_reduction <add>, %176, %cst_57 [1] : vector<8x8xf32> to vector<8xf32>
    %178 = vector.shape_cast %177 : vector<8xf32> to vector<8x1xf32>
    %179 = tpu.reciprocal %178 {approx = true} : vector<8x1xf32> -> vector<8x1xf32>
    %180 = vector.broadcast %179 : vector<8x1xf32> to vector<8x8xf32>
    %181 = arith.mulf %176, %180 : vector<8x8xf32>
    %182 = arith.truncf %181 : vector<8x8xf32> to vector<8x8xbf16>
    %cst_58 = arith.constant dense<0.000000e+00> : vector<8x128xf32>
    %183 = tpu.matmul %182, %168, %cst_58 {dimension_numbers = #tpu.dot_dimension_numbers<[1], [0], [0], [1], [0, 0, 1, 1], [], []>} : vector<8x8xbf16>, vector<8x128xbf16>, vector<8x128xf32> -> vector<8x128xf32>
    %184 = arith.truncf %183 : vector<8x128xf32> to vector<8x128xbf16>
    %c8_59 = arith.constant 8 : index
    %c256_60 = arith.constant 256 : index
    %185 = vector.load %arg6[%c8_59, %c256_60] : memref<16x768xbf16, #tpu.memory_space<vmem>>, vector<8x128xbf16>
    tpu.vector_store %arg6[%c8_59, %c256_60], %184 {strides = array<i32>} : memref<16x768xbf16, #tpu.memory_space<vmem>>, vector<8x128xbf16>,
    %186 = vector.extract_strided_slice %5 {offsets = [8, 384], sizes = [8, 128], strides = [1, 1]} : vector<16x2304xbf16> to vector<8x128xbf16>
    %187 = vector.extract_strided_slice %5 {offsets = [8, 1152], sizes = [8, 128], strides = [1, 1]} : vector<16x2304xbf16> to vector<8x128xbf16>
    %188 = vector.extract_strided_slice %5 {offsets = [8, 1920], sizes = [8, 128], strides = [1, 1]} : vector<16x2304xbf16> to vector<8x128xbf16>
    %cst_61 = arith.constant dense<0.000000e+00> : vector<8x8xf32>
    %189 = tpu.matmul %186, %187, %cst_61 {dimension_numbers = #tpu.dot_dimension_numbers<[1], [1], [0], [0], [0, 0, 1, 0], [], []>} : vector<8x128xbf16>, vector<8x128xbf16>, vector<8x8xf32> -> vector<8x8xf32>
    %cst_62 = arith.constant 1.250000e-01 : f32
    %190 = vector.broadcast %cst_62 : f32 to vector<8x8xf32>
    %191 = arith.mulf %189, %190 : vector<8x8xf32>
    %cst_63 = arith.constant dense<0xFF800000> : vector<8xf32>
    %192 = vector.multi_reduction <maximumf>, %191, %cst_63 [1] : vector<8x8xf32> to vector<8xf32>
    %193 = vector.shape_cast %192 : vector<8xf32> to vector<8x1xf32>
    %194 = vector.broadcast %193 : vector<8x1xf32> to vector<8x8xf32>
    %195 = arith.subf %191, %194 : vector<8x8xf32>
    %196 = math.exp %195 : vector<8x8xf32>
    %cst_64 = arith.constant dense<0.000000e+00> : vector<8xf32>
    %197 = vector.multi_reduction <add>, %196, %cst_64 [1] : vector<8x8xf32> to vector<8xf32>
    %198 = vector.shape_cast %197 : vector<8xf32> to vector<8x1xf32>
    %199 = tpu.reciprocal %198 {approx = true} : vector<8x1xf32> -> vector<8x1xf32>
    %200 = vector.broadcast %199 : vector<8x1xf32> to vector<8x8xf32>
    %201 = arith.mulf %196, %200 : vector<8x8xf32>
    %202 = arith.truncf %201 : vector<8x8xf32> to vector<8x8xbf16>
    %cst_65 = arith.constant dense<0.000000e+00> : vector<8x128xf32>
    %203 = tpu.matmul %202, %188, %cst_65 {dimension_numbers = #tpu.dot_dimension_numbers<[1], [0], [0], [1], [0, 0, 1, 1], [], []>} : vector<8x8xbf16>, vector<8x128xbf16>, vector<8x128xf32> -> vector<8x128xf32>
    %204 = arith.truncf %203 : vector<8x128xf32> to vector<8x128xbf16>
    %c8_66 = arith.constant 8 : index
    %c384_67 = arith.constant 384 : index
    %205 = vector.load %arg6[%c8_66, %c384_67] : memref<16x768xbf16, #tpu.memory_space<vmem>>, vector<8x128xbf16>
    tpu.vector_store %arg6[%c8_66, %c384_67], %204 {strides = array<i32>} : memref<16x768xbf16, #tpu.memory_space<vmem>>, vector<8x128xbf16>,
    %206 = vector.extract_strided_slice %5 {offsets = [8, 512], sizes = [8, 128], strides = [1, 1]} : vector<16x2304xbf16> to vector<8x128xbf16>
    %207 = vector.extract_strided_slice %5 {offsets = [8, 1280], sizes = [8, 128], strides = [1, 1]} : vector<16x2304xbf16> to vector<8x128xbf16>
    %208 = vector.extract_strided_slice %5 {offsets = [8, 2048], sizes = [8, 128], strides = [1, 1]} : vector<16x2304xbf16> to vector<8x128xbf16>
    %cst_68 = arith.constant dense<0.000000e+00> : vector<8x8xf32>
    %209 = tpu.matmul %206, %207, %cst_68 {dimension_numbers = #tpu.dot_dimension_numbers<[1], [1], [0], [0], [0, 0, 1, 0], [], []>} : vector<8x128xbf16>, vector<8x128xbf16>, vector<8x8xf32> -> vector<8x8xf32>
    %cst_69 = arith.constant 1.250000e-01 : f32
    %210 = vector.broadcast %cst_69 : f32 to vector<8x8xf32>
    %211 = arith.mulf %209, %210 : vector<8x8xf32>
    %cst_70 = arith.constant dense<0xFF800000> : vector<8xf32>
    %212 = vector.multi_reduction <maximumf>, %211, %cst_70 [1] : vector<8x8xf32> to vector<8xf32>
    %213 = vector.shape_cast %212 : vector<8xf32> to vector<8x1xf32>
    %214 = vector.broadcast %213 : vector<8x1xf32> to vector<8x8xf32>
    %215 = arith.subf %211, %214 : vector<8x8xf32>
    %216 = math.exp %215 : vector<8x8xf32>
    %cst_71 = arith.constant dense<0.000000e+00> : vector<8xf32>
    %217 = vector.multi_reduction <add>, %216, %cst_71 [1] : vector<8x8xf32> to vector<8xf32>
    %218 = vector.shape_cast %217 : vector<8xf32> to vector<8x1xf32>
    %219 = tpu.reciprocal %218 {approx = true} : vector<8x1xf32> -> vector<8x1xf32>
    %220 = vector.broadcast %219 : vector<8x1xf32> to vector<8x8xf32>
    %221 = arith.mulf %216, %220 : vector<8x8xf32>
    %222 = arith.truncf %221 : vector<8x8xf32> to vector<8x8xbf16>
    %cst_72 = arith.constant dense<0.000000e+00> : vector<8x128xf32>
    %223 = tpu.matmul %222, %208, %cst_72 {dimension_numbers = #tpu.dot_dimension_numbers<[1], [0], [0], [1], [0, 0, 1, 1], [], []>} : vector<8x8xbf16>, vector<8x128xbf16>, vector<8x128xf32> -> vector<8x128xf32>
    %224 = arith.truncf %223 : vector<8x128xf32> to vector<8x128xbf16>
    %c8_73 = arith.constant 8 : index
    %c512_74 = arith.constant 512 : index
    %225 = vector.load %arg6[%c8_73, %c512_74] : memref<16x768xbf16, #tpu.memory_space<vmem>>, vector<8x128xbf16>
    tpu.vector_store %arg6[%c8_73, %c512_74], %224 {strides = array<i32>} : memref<16x768xbf16, #tpu.memory_space<vmem>>, vector<8x128xbf16>,
    %226 = vector.extract_strided_slice %5 {offsets = [8, 640], sizes = [8, 128], strides = [1, 1]} : vector<16x2304xbf16> to vector<8x128xbf16>
    %227 = vector.extract_strided_slice %5 {offsets = [8, 1408], sizes = [8, 128], strides = [1, 1]} : vector<16x2304xbf16> to vector<8x128xbf16>
    %228 = vector.extract_strided_slice %5 {offsets = [8, 2176], sizes = [8, 128], strides = [1, 1]} : vector<16x2304xbf16> to vector<8x128xbf16>
    %cst_75 = arith.constant dense<0.000000e+00> : vector<8x8xf32>
    %229 = tpu.matmul %226, %227, %cst_75 {dimension_numbers = #tpu.dot_dimension_numbers<[1], [1], [0], [0], [0, 0, 1, 0], [], []>} : vector<8x128xbf16>, vector<8x128xbf16>, vector<8x8xf32> -> vector<8x8xf32>
    %cst_76 = arith.constant 1.250000e-01 : f32
    %230 = vector.broadcast %cst_76 : f32 to vector<8x8xf32>
    %231 = arith.mulf %229, %230 : vector<8x8xf32>
    %cst_77 = arith.constant dense<0xFF800000> : vector<8xf32>
    %232 = vector.multi_reduction <maximumf>, %231, %cst_77 [1] : vector<8x8xf32> to vector<8xf32>
    %233 = vector.shape_cast %232 : vector<8xf32> to vector<8x1xf32>
    %234 = vector.broadcast %233 : vector<8x1xf32> to vector<8x8xf32>
    %235 = arith.subf %231, %234 : vector<8x8xf32>
    %236 = math.exp %235 : vector<8x8xf32>
    %cst_78 = arith.constant dense<0.000000e+00> : vector<8xf32>
    %237 = vector.multi_reduction <add>, %236, %cst_78 [1] : vector<8x8xf32> to vector<8xf32>
    %238 = vector.shape_cast %237 : vector<8xf32> to vector<8x1xf32>
    %239 = tpu.reciprocal %238 {approx = true} : vector<8x1xf32> -> vector<8x1xf32>
    %240 = vector.broadcast %239 : vector<8x1xf32> to vector<8x8xf32>
    %241 = arith.mulf %236, %240 : vector<8x8xf32>
    %242 = arith.truncf %241 : vector<8x8xf32> to vector<8x8xbf16>
    %cst_79 = arith.constant dense<0.000000e+00> : vector<8x128xf32>
    %243 = tpu.matmul %242, %228, %cst_79 {dimension_numbers = #tpu.dot_dimension_numbers<[1], [0], [0], [1], [0, 0, 1, 1], [], []>} : vector<8x8xbf16>, vector<8x128xbf16>, vector<8x128xf32> -> vector<8x128xf32>
    %244 = arith.truncf %243 : vector<8x128xf32> to vector<8x128xbf16>
    %c8_80 = arith.constant 8 : index
    %c640_81 = arith.constant 640 : index
    %245 = vector.load %arg6[%c8_80, %c640_81] : memref<16x768xbf16, #tpu.memory_space<vmem>>, vector<8x128xbf16>
    tpu.vector_store %arg6[%c8_80, %c640_81], %244 {strides = array<i32>} : memref<16x768xbf16, #tpu.memory_space<vmem>>, vector<8x128xbf16>,
    %c0_82 = arith.constant 0 : index
    %c0_83 = arith.constant 0 : index
    %246 = vector.load %arg6[%c0_82, %c0_83] : memref<16x768xbf16, #tpu.memory_space<vmem>>, vector<16x768xbf16>
    %c0_84 = arith.constant 0 : index
    %c0_85 = arith.constant 0 : index
    %247 = vector.load %arg3[%c0_84, %c0_85] : memref<768x32xbf16, #tpu.memory_space<vmem>>, vector<768x32xbf16>
    %cst_86 = arith.constant dense<0.000000e+00> : vector<16x32xf32>
    %248 = tpu.matmul %246, %247, %cst_86 {dimension_numbers = #tpu.dot_dimension_numbers<[1], [0], [0], [1], [0, 0, 1, 1], [], []>} : vector<16x768xbf16>, vector<768x32xbf16>, vector<16x32xf32> -> vector<16x32xf32>
    %c0_87 = arith.constant 0 : index
    %c0_88 = arith.constant 0 : index
    %249 = vector.load %arg4[%c0_87, %c0_88] : memref<1x32xf32, #tpu.memory_space<vmem>>, vector<1x32xf32>
    %250 = vector.broadcast %249 : vector<1x32xf32> to vector<16x32xf32>
    %251 = arith.addf %248, %250 : vector<16x32xf32>
    %252 = vector.shape_cast %251 : vector<16x32xf32> to vector<2x8x32xf32>
    %c0_89 = arith.constant 0 : index
    %c0_90 = arith.constant 0 : index
    %c0_91 = arith.constant 0 : index
    %253 = vector.load %arg5[%c0_89, %c0_90, %c0_91] : memref<2x8x32xf32, #tpu.memory_space<vmem>>, vector<2x8x32xf32>
    tpu.vector_store %arg5[%c0_89, %c0_90, %c0_91], %252 {strides = array<i32>} : memref<2x8x32xf32, #tpu.memory_space<vmem>>, vector<2x8x32xf32>,
    return
  }
  func.func @transform_0(%arg0: i32) -> (i32, i32, i32) {
    %c0_i32 = arith.constant 0 : i32
    %c0_i32_0 = arith.constant 0 : i32
    %c0_i32_1 = arith.constant 0 : i32
    return %arg0, %c0_i32, %c0_i32_0 : i32, i32, i32
  }
  func.func @transform_1(%arg0: i32) -> (i32, i32) {
    %c0_i32 = arith.constant 0 : i32
    %c0_i32_0 = arith.constant 0 : i32
    %c0_i32_1 = arith.constant 0 : i32
    return %c0_i32, %c0_i32_0 : i32, i32
  }
  func.func @transform_2(%arg0: i32) -> (i32, i32) {
    %c0_i32 = arith.constant 0 : i32
    %c0_i32_0 = arith.constant 0 : i32
    %c0_i32_1 = arith.constant 0 : i32
    return %c0_i32, %c0_i32_0 : i32, i32
  }
  func.func @transform_3(%arg0: i32) -> (i32, i32) {
    %c0_i32 = arith.constant 0 : i32
    %c0_i32_0 = arith.constant 0 : i32
    %c0_i32_1 = arith.constant 0 : i32
    return %c0_i32, %c0_i32_0 : i32, i32
  }
  func.func @transform_4(%arg0: i32) -> (i32, i32, i32) {
    %c0_i32 = arith.constant 0 : i32
    %c0_i32_0 = arith.constant 0 : i32
    %c0_i32_1 = arith.constant 0 : i32
    return %arg0, %c0_i32, %c0_i32_0 : i32, i32, i32
  }
}

</mosaic_0001>

<bundles_post_ra>
// kernel: attention_forward.1
= control target key start
LH: loop header
LB: loop body
LE: loop exit
PB: predicated region body
PF: predicated region fallthrough
CT: control target
= control target key end

     0   :  { %v3009_v2 = vmov 0   ;;  %vm238_vm0 = vcmask 261120   ;;  %s3608_s0 = inlined_call_operand.vmem [shape: f32[2,8,32], index: 0, kind: input, shape index: {}]   ;;  %s3609_s1 = inlined_call_operand.vmem [shape: bf16[32,2304], index: 1, kind: input, shape index: {}]   ;;  %s3610_s2 = inlined_call_operand.vmem [shape: bf16[768,32], index: 2, kind: input, shape index: {}]   ;;  %s3611_s3 = inlined_call_operand.vmem [shape: f32[1,32], index: 3, kind: input, shape index: {}]   ;;  %s3612_s4 = inlined_call_operand.hbm [shape: f32[2,8,32], index: 4, kind: output, shape index: {}]  }
   0x1   :  { %v2835_v0 = vld [vmem:[%s3609_s1 + $0x4] ss:$72 sps:$4 sm:$0xff]   ;;  %274 = vmatprep.mubr.bf16.mxu0 %v3009_v2  ;;  %403 = vmatprep.mubr.bf16.mxu1 %v3009_v2  ;;  %v2839_v3 = vld [vmem:[%s3609_s1] ss:$72 sps:$4 sm:$0xff]   ;;  %v2841_v5 = vld [vmem:[%s3609_s1 + $0x94] ss:$72 sps:$4 sm:$0xff]  }
   0x2   :  { %v2837_v1 = vld [vmem:[%s3609_s1 + $0x1c] ss:$72 sps:$4 sm:$0xff]   ;;  %242 = vmatprep.subr.bf16.mxu0 %v2835_v0  ;;  %v2840_v4 = vld [vmem:[%s3609_s1 + $0x18] ss:$72 sps:$4 sm:$0xff]   ;;  %v2843_v6 = vld [vmem:[%s3609_s1 + $0xac] ss:$72 sps:$4 sm:$0xff]  }
   0x3   :  { %371 = vmatprep.subr.bf16.mxu1 %v2837_v1  ;;  %243 = vmatpush1.bf16.msra.mxu0 %v2839_v3  ;;  %v2845_v7 = vld [vmem:[%s3609_s1 + $0x90] ss:$72 sps:$4 sm:$0xff]   ;;  %v19_v9 = vld [vmem:[%s3608_s0] sm:$0xff]  ;;  %v20_v10 = vld [vmem:[%s3608_s0 + $0x8] sm:$0xff] }
   0x4   :  { %372 = vmatpush1.bf16.msra.mxu1 %v2840_v4  ;;  %244 = vmatprep.subr.bf16.mxu0 %v2841_v5  ;;  %v2846_v8 = vld [vmem:[%s3609_s1 + $0xa8] ss:$72 sps:$4 sm:$0xff]   ;;  %v3072_v11 = vpack.c.bf16 %v20_v10, %v19_v9  ;;  %v2849_v12 = vld [vmem:[%s3609_s1 + $0xc] ss:$72 sps:$4 sm:$0xff]   ;;  %v2852_v14 = vld [vmem:[%s3609_s1 + $0x9c] ss:$72 sps:$4 sm:$0xff]  }
   0x5   :  { %373 = vmatprep.subr.bf16.mxu1 %v2843_v6  ;;  %v2847_v13 = vld [vmem:[%s3609_s1 + $0x8] ss:$72 sps:$4 sm:$0xff]   ;;  %v2850_v15 = vld [vmem:[%s3609_s1 + $0x98] ss:$72 sps:$4 sm:$0xff]   ;;  %v2855_v16 = vld [vmem:[%s3609_s1 + $0x14] ss:$72 sps:$4 sm:$0xff]  }
   0x6   :  { %v2865_v17 = vld [vmem:[%s3609_s1 + $0x28] ss:$72 sps:$4 sm:$0xff]   ;;  %v2867_v18 = vld [vmem:[%s3609_s1 + $0x2c] ss:$72 sps:$4 sm:$0xff]   ;;  %v2870_v20 = vld [vmem:[%s3609_s1 + $0xbc] ss:$72 sps:$4 sm:$0xff]  }
   0x7   :  { %245 = vmatpush1.bf16.msra.mxu0 %v2845_v7  ;;  %v2853_v19 = vld [vmem:[%s3609_s1 + $0x10] ss:$72 sps:$4 sm:$0xff]   ;;  %v2858_v21 = vld [vmem:[%s3609_s1 + $0xa4] ss:$72 sps:$4 sm:$0xff]   ;;  %v2856_v22 = vld [vmem:[%s3609_s1 + $0xa0] ss:$72 sps:$4 sm:$0xff]  }
   0x8   :  { %374 = vmatpush1.bf16.msra.mxu1 %v2846_v8  ;;  %285 = vmatprep.subr.bf16.mxu0 %v2849_v12  ;;  %v2868_v23 = vld [vmem:[%s3609_s1 + $0xb8] ss:$72 sps:$4 sm:$0xff]   ;;  %v2861_v24 = vld [vmem:[%s3609_s1 + $0x24] ss:$72 sps:$4 sm:$0xff]   ;;  %v2864_v29 = vld [vmem:[%s3609_s1 + $0xb4] ss:$72 sps:$4 sm:$0xff]  }
   0x9   :  { %457 = vmatprep.subr.bf16.mxu1 %v2867_v18  ;;  %v2873_v25 = vld [vmem:[%s3609_s1 + $0x3c] ss:$72 sps:$4 sm:$0xff]   ;;  %v2871_v26 = vld [vmem:[%s3609_s1 + $0x38] ss:$72 sps:$4 sm:$0xff]   ;;  %v2876_v27 = vld [vmem:[%s3609_s1 + $0xcc] ss:$72 sps:$4 sm:$0xff]  }
   0xa   :  { %2501 = vmatmul.mubr.msk.bf16.vlgmr.msra.gmra.mrb[0].mxu0 %vm238_vm0, %v3072_v11  ;;  %v2859_v28 = vld [vmem:[%s3609_s1 + $0x20] ss:$72 sps:$4 sm:$0xff]   ;;  %v2862_v31 = vld [vmem:[%s3609_s1 + $0xb0] ss:$72 sps:$4 sm:$0xff]  }
   0xb   :  { %2504 = vmatmul.mubr.msk.bf16.vlgmr.msra.gmra.mrb[0].mxu1 %vm238_vm0, %v3072_v11  ;;  %286 = vmatpush1.bf16.msra.mxu0 %v2847_v13  ;;  %v2874_v30 = vld [vmem:[%s3609_s1 + $0xc8] ss:$72 sps:$4 sm:$0xff]  }
   0xc   :  { %317 = vmatprep.mubr.bf16.mxu0 %v3009_v2  ;;  %287 = vmatprep.subr.bf16.mxu0 %v2852_v14 }
   0xd   :  { %489 = vmatprep.mubr.bf16.mxu1 %v3009_v2  ;;  %458 = vmatpush1.bf16.msra.mxu1 %v2865_v17 }
   0xe   :  { %459 = vmatprep.subr.bf16.mxu1 %v2870_v20 }
   0xf   :  { %288 = vmatpush1.bf16.msra.mxu0 %v2850_v15 }
  0x10   :  { %328 = vmatprep.subr.bf16.mxu0 %v2855_v16 }
  0x11   :  { %460 = vmatpush1.bf16.msra.mxu1 %v2868_v23 }
  0x12   :  { %2502 = vmatmul.mubr.msk.bf16.vlgmr.msra.gmra.mrb[4].mxu0 %vm238_vm0, %v3072_v11  ;;  %543 = vmatprep.subr.bf16.mxu1 %v2873_v25 }
  0x13   :  { %329 = vmatpush1.bf16.msra.mxu0 %v2853_v19  ;;  %360 = vmatprep.mubr.bf16.mxu0 %v3009_v2 }
  0x14   :  { %330 = vmatprep.subr.bf16.mxu0 %v2858_v21  ;;  %2506 = vmatmul.mubr.msk.bf16.vlgmr.msra.gmra.mrb[4].mxu1 %vm238_vm0, %v3072_v11 }
  0x15   :  { %544 = vmatpush1.bf16.msra.mxu1 %v2871_v26  ;;  %575 = vmatprep.mubr.bf16.mxu1 %v3009_v2 }
  0x16   :  { %545 = vmatprep.subr.bf16.mxu1 %v2876_v27 }
  0x17   :  { %331 = vmatpush1.bf16.msra.mxu0 %v2856_v22 }
  0x18   :  { %414 = vmatprep.subr.bf16.mxu0 %v2861_v24 }
  0x19   :  { %546 = vmatpush1.bf16.msra.mxu1 %v2874_v30 }
  0x1a   :  { %2503 = vmatmul.mubr.msk.bf16.vlgmr.msra.gmra.mrb[8].mxu0 %vm238_vm0, %v3072_v11 }
  0x1b   :  { %415 = vmatpush1.bf16.msra.mxu0 %v2859_v28  ;;  %446 = vmatprep.mubr.bf16.mxu0 %v3009_v2 }
  0x1c   :  { %416 = vmatprep.subr.bf16.mxu0 %v2864_v29  ;;  %2508 = vmatmul.mubr.msk.bf16.vlgmr.msra.gmra.mrb[8].mxu1 %vm238_vm0, %v3072_v11 }
  0x1f   :  { %417 = vmatpush1.bf16.msra.mxu0 %v2862_v31 }
  0x22   :  { %2505 = vmatmul.mubr.msk.bf16.vlgmr.msra.gmra.mrb[12].mxu0 %vm238_vm0, %v3072_v11 }
  0x23   :  { %532 = vmatprep.mubr.bf16.mxu0 %v3009_v2 }
  0x24   :  { %9 = vsyncpa [#allocation4], 0  ;;  %v3010_v32 = vmov 0.0   ;;  %vm3011_vm1 = vmmov 0   ;;  %v2877_v25 = vld [vmem:[%s3609_s1 + $0x30] ss:$72 sps:$4 sm:$0xff]  }
  0x25   :  { %2685 = vmatprep.subr.bf16.mxu1 %v3010_v32  ;;  %2687 = vmatprep.mubr.msk.bf16.mxu1 %vm3011_vm1, %v3010_v32  ;;  %v2879_v26 = vld [vmem:[%s3609_s1 + $0x34] ss:$72 sps:$4 sm:$0xff]   ;;  %v2880_v27 = vld [vmem:[%s3609_s1 + $0xc0] ss:$72 sps:$4 sm:$0xff]   ;;  %v2882_v28 = vld [vmem:[%s3609_s1 + $0xc4] ss:$72 sps:$4 sm:$0xff]  }
  0x26   :  { %500 = vmatprep.subr.bf16.mxu0 %v2879_v26  ;;  %v2883_v29 = vld [vmem:[%s3609_s1 + $0x40] ss:$72 sps:$4 sm:$0xff]   ;;  %v2885_v30 = vld [vmem:[%s3609_s1 + $0x44] ss:$72 sps:$4 sm:$0xff]   ;;  %v2888_v31 = vld [vmem:[%s3609_s1 + $0xd4] ss:$72 sps:$4 sm:$0xff]  }
  0x27   :  { %501 = vmatpush1.bf16.msra.mxu0 %v2877_v25  ;;  %vm688_vm2 = vcmask 64512   ;;  %vm704_vm3 = vcmask 1043456  }
  0x28   :  { %502 = vmatprep.subr.bf16.mxu0 %v2882_v28 }
  0x2b   :  { %503 = vmatpush1.bf16.msra.mxu0 %v2880_v27 }
  0x2c   :  { %586 = vmatprep.subr.bf16.mxu0 %v2885_v30 }
  0x2e   :  { %2507 = vmatmul.mubr.msk.bf16.vlgmr.msra.gmra.mrb[16].mxu0 %vm238_vm0, %v3072_v11 }
  0x2f   :  { %618 = vmatprep.mubr.bf16.mxu0 %v3009_v2  ;;  %587 = vmatpush1.bf16.msra.mxu0 %v2883_v29 }
  0x30   :  { %588 = vmatprep.subr.bf16.mxu0 %v2888_v31 }
  0xdd   :  { %v276_v33 = vpop.f32.mrb[0].mxu0 }
  0xde   :  { %v405_v34 = vpop.f32.mrb[0].mxu1  ;;  %v278_v35 = vpop.f32.mrb[1].mxu0 }
  0xdf   :  { %v407_v36 = vpop.f32.mrb[1].mxu1  ;;  %v280_v37 = vpop.f32.mrb[2].mxu0 }
  0xe0   :  { %v409_v38 = vpop.f32.mrb[2].mxu1  ;;  %v3157_v39 = vpack.c.bf16 %v280_v37, %v276_v33  ;;  %v282_v41 = vpop.f32.mrb[3].mxu0  ;;  %v2886_v33 = vld [vmem:[%s3609_s1 + $0xd0] ss:$72 sps:$4 sm:$0xff]  }
  0xe1   :  { %v635_v40 = vpack.c.bf16 %v409_v38, %v405_v34  ;;  %v411_v42 = vpop.f32.mrb[3].mxu1  ;;  %v3159_v43 = vpack.c.bf16 %v282_v41, %v278_v35  ;;  %589 = vmatpush1.bf16.msra.mxu0 %v2886_v33 }
  0xe2   :  { %v636_v44 = vpack.c.bf16 %v411_v42, %v407_v36  ;;  %v1256_v14 = vrot.slane %v3157_v39, 4  ;;  %2691 = vmatprep.subr.bf16.mxu0 %v3010_v32 }
  0xe3   :  { %2686 = vmatpush3.bf16.xpose.msra.mxu1 %v635_v40  ;;  %v1259_v13 = vrot.slane %v635_v40, 4  ;;  %v1368_v16 = vrot.slane %v3159_v43, 4 }
  0xe4   :  { %2697 = vmatprep.subr.bf16.mxu1 %v3010_v32  ;;  %v1371_v15 = vrot.slane %v636_v44, 4  ;;  %2509 = vmatmul.mubr.msk.bf16.vlgmr.msra.gmra.mrb[20].mxu0 %vm238_vm0, %v3072_v11 }
  0xe5   :  { %v319_v45 = vpop.f32.mrb[4].mxu0  ;;  %2693 = vmatprep.mubr.msk.bf16.mxu0 %vm3011_vm1, %v3010_v32 }
  0xe6   :  { %v321_v46 = vpop.f32.mrb[5].mxu0 }
  0xe7   :  { %v323_v47 = vpop.f32.mrb[6].mxu0  ;;  %v491_v51 = vpop.f32.mrb[4].mxu1 }
  0xe8   :  { %v3162_v48 = vpack.c.bf16 %v323_v47, %v319_v45  ;;  %v325_v49 = vpop.f32.mrb[7].mxu0  ;;  %v493_v52 = vpop.f32.mrb[5].mxu1 }
  0xe9   :  { %v3164_v50 = vpack.c.bf16 %v325_v49, %v321_v46  ;;  %v495_v54 = vpop.f32.mrb[6].mxu1 }
  0xea   :  { %2688 = vmatmul.mubr.bf16.vlgmr.msra.gmra.mrb[12].mxu1 %v3157_v39  ;;  %v639_v56 = vpack.c.bf16 %v495_v54, %v491_v51  ;;  %v497_v57 = vpop.f32.mrb[7].mxu1  ;;  %v1480_v18 = vrot.slane %v3162_v48, 4 }
  0xeb   :  { %2698 = vmatpush3.bf16.xpose.msra.mxu1 %v636_v44  ;;  %2699 = vmatprep.mubr.msk.bf16.mxu1 %vm3011_vm1, %v3010_v32  ;;  %v3170_v59 = vpack.c.bf16 %v497_v57, %v493_v52  ;;  %v1592_v20 = vrot.slane %v3164_v50, 4 }
  0xec   :  { %2709 = vmatprep.subr.bf16.mxu1 %v3010_v32  ;;  %v1707_v21 = vrot.slane %v639_v56, 4 }
  0xed   :  { %v362_v53 = vpop.f32.mrb[8].mxu0  ;;  %v1819_v23 = vrot.slane %v3170_v59, 4 }
  0xee   :  { %v364_v55 = vpop.f32.mrb[9].mxu0 }
  0xef   :  { %v366_v58 = vpop.f32.mrb[10].mxu0  ;;  %v577_v63 = vpop.f32.mrb[8].mxu1 }
  0xf0   :  { %v633_v60 = vpack.c.bf16 %v366_v58, %v362_v53  ;;  %v368_v61 = vpop.f32.mrb[11].mxu0  ;;  %v579_v0 = vpop.f32.mrb[9].mxu1 }
  0xf1   :  { %v3172_v62 = vpack.c.bf16 %v368_v61, %v364_v55  ;;  %v581_v3 = vpop.f32.mrb[10].mxu1 }
  0xf2   :  { %2700 = vmatmul.mubr.bf16.vlgmr.msra.gmra.mrb[16].mxu1 %v3159_v43  ;;  %v3177_v5 = vpack.c.bf16 %v581_v3, %v577_v63  ;;  %v583_v6 = vpop.f32.mrb[11].mxu1  ;;  %v1704_v22 = vrot.slane %v633_v60, 4 }
  0xf3   :  { %2711 = vmatprep.mubr.msk.bf16.mxu1 %vm3011_vm1, %v3010_v32  ;;  %v3179_v8 = vpack.c.bf16 %v583_v6, %v579_v0  ;;  %v1816_v24 = vrot.slane %v3172_v62, 4 }
  0xf5   :  { %v448_v1 = vpop.f32.mrb[12].mxu0 }
  0xf6   :  { %v450_v4 = vpop.f32.mrb[13].mxu0 }
  0xf7   :  { %v452_v7 = vpop.f32.mrb[14].mxu0 }
  0xf8   :  { %v637_v9 = vpack.c.bf16 %v452_v7, %v448_v1  ;;  %v454_v10 = vpop.f32.mrb[15].mxu0 }
  0xf9   :  { %v638_v12 = vpack.c.bf16 %v454_v10, %v450_v4 }
  0xfa   :  { %2710 = vmatpush3.bf16.xpose.msra.mxu1 %v637_v9  ;;  %v1483_v17 = vrot.slane %v637_v9, 4 }
  0xfb   :  { %2721 = vmatprep.subr.bf16.mxu1 %v3010_v32  ;;  %v1595_v19 = vrot.slane %v638_v12, 4 }
 0x101   :  { %2712 = vmatmul.mubr.bf16.vlgmr.msra.gmra.mrb[20].mxu1 %v3162_v48 }
 0x102   :  { %2722 = vmatpush3.bf16.xpose.msra.mxu1 %v638_v12  ;;  %2723 = vmatprep.mubr.msk.bf16.mxu1 %vm3011_vm1, %v3010_v32 }
 0x103   :  { %2733 = vmatprep.subr.bf16.mxu1 %v3010_v32 }
 0x109   :  { %2724 = vmatmul.mubr.bf16.vlgmr.msra.gmra.mrb[24].mxu1 %v3164_v50 }
 0x10a   :  { %2734 = vmatpush3.bf16.xpose.msra.mxu1 %v639_v56  ;;  %2735 = vmatprep.mubr.msk.bf16.mxu1 %vm3011_vm1, %v3010_v32 }
 0x10b   :  { %2745 = vmatprep.subr.bf16.mxu1 %v3010_v32 }
 0x111   :  { %2736 = vmatmul.mubr.bf16.vlgmr.msra.gmra.mrb[28].mxu1 %v633_v60 }
 0x112   :  { %2746 = vmatpush3.bf16.xpose.msra.mxu1 %v3170_v59  ;;  %2747 = vmatprep.mubr.msk.bf16.mxu1 %vm3011_vm1, %v3010_v32 }
 0x113   :  { %2757 = vmatprep.subr.bf16.mxu1 %v3010_v32 }
 0x119   :  { %2748 = vmatmul.mubr.bf16.vlgmr.msra.gmra.mrb[32].mxu1 %v3172_v62 }
 0x11a   :  { %2758 = vmatpush3.bf16.xpose.msra.mxu1 %v1259_v13  ;;  %2759 = vmatprep.mubr.msk.bf16.mxu1 %vm3011_vm1, %v3010_v32 }
 0x11b   :  { %2769 = vmatprep.subr.bf16.mxu1 %v3010_v32 }
 0x121   :  { %2760 = vmatmul.mubr.bf16.vlgmr.msra.gmra.mrb[36].mxu1 %v1256_v14 }
 0x122   :  { %2770 = vmatpush3.bf16.xpose.msra.mxu1 %v1371_v15  ;;  %2771 = vmatprep.mubr.msk.bf16.mxu1 %vm3011_vm1, %v3010_v32 }
 0x123   :  { %2781 = vmatprep.subr.bf16.mxu1 %v3010_v32 }
 0x129   :  { %2772 = vmatmul.mubr.bf16.vlgmr.msra.gmra.mrb[40].mxu1 %v1368_v16 }
 0x12a   :  { %2782 = vmatpush3.bf16.xpose.msra.mxu1 %v1483_v17  ;;  %2783 = vmatprep.mubr.msk.bf16.mxu1 %vm3011_vm1, %v3010_v32 }
 0x12b   :  { %2793 = vmatprep.subr.bf16.mxu1 %v3010_v32 }
 0x131   :  { %2784 = vmatmul.mubr.bf16.vlgmr.msra.gmra.mrb[44].mxu1 %v1480_v18 }
 0x132   :  { %2794 = vmatpush3.bf16.xpose.msra.mxu1 %v1595_v19  ;;  %2795 = vmatprep.mubr.msk.bf16.mxu1 %vm3011_vm1, %v3010_v32 }
 0x133   :  { %2805 = vmatprep.subr.bf16.mxu1 %v3010_v32 }
 0x139   :  { %2796 = vmatmul.mubr.bf16.vlgmr.msra.gmra.mrb[48].mxu1 %v1592_v20 }
 0x13a   :  { %2806 = vmatpush3.bf16.xpose.msra.mxu1 %v1707_v21  ;;  %2807 = vmatprep.mubr.msk.bf16.mxu1 %vm3011_vm1, %v3010_v32 }
 0x13b   :  { %2817 = vmatprep.subr.bf16.mxu1 %v3010_v32 }
 0x141   :  { %2808 = vmatmul.mubr.bf16.vlgmr.msra.gmra.mrb[52].mxu1 %v1704_v22 }
 0x142   :  { %2818 = vmatpush3.bf16.xpose.msra.mxu1 %v1819_v23  ;;  %2819 = vmatprep.mubr.msk.bf16.mxu1 %vm3011_vm1, %v3010_v32 }
 0x149   :  { %2820 = vmatmul.mubr.bf16.vlgmr.msra.gmra.mrb[56].mxu1 %v1816_v24 }
 0x1bd   :  { %v681_v2 = vpop.f32.mrb[12].mxu1 }
 0x1be   :  { %v3250_v34 = vmul.f32 0.125, %v681_v2  ;;  %v2689_v35 = vpop.f32.mrb[13].mxu1 }
 0x1bf   :  { %v684_v36 = vpop.f32.mrb[14].mxu1 }
 0x1c0   :  { %v2690_v37 = vpop.f32.mrb[15].mxu1  ;;  %v689_v38 = vsel %vm688_vm2, %v3250_v34, -inf }
 0x1c1   :  { %690 = vmax.xlane.f32.xlu0 %v689_v38 }
 0x1c5   :  { %v784_v39 = vpop.f32.mrb[16].mxu1 }
 0x1c6   :  { %v3254_v40 = vmul.f32 0.125, %v784_v39  ;;  %v2701_v41 = vpop.f32.mrb[17].mxu1 }
 0x1c7   :  { %v787_v42 = vpop.f32.mrb[18].mxu1 }
 0x1c8   :  { %v2702_v11 = vpop.f32.mrb[19].mxu1  ;;  %v791_v43 = vsel %vm688_vm2, %v3254_v40, -inf }
 0x1c9   :  { %792 = vmax.xlane.f32.xlu0 %v791_v43 }
 0x1d4   :  { %v885_v44 = vpop.f32.mrb[20].mxu1 }
 0x1d5   :  { %v3258_v45 = vmul.f32 0.125, %v885_v44  ;;  %v2713_v46 = vpop.f32.mrb[21].mxu1 }
 0x1d6   :  { %v888_v47 = vpop.f32.mrb[22].mxu1 }
 0x1d7   :  { %v2714_v48 = vpop.f32.mrb[23].mxu1  ;;  %v892_v49 = vsel %vm688_vm2, %v3258_v45, -inf }
 0x1d8   :  { %893 = vmax.xlane.f32.xlu1 %v892_v49 }
 0x1dc   :  { %v986_v50 = vpop.f32.mrb[24].mxu1 }
 0x1dd   :  { %v3262_v51 = vmul.f32 0.125, %v986_v50  ;;  %v2725_v52 = vpop.f32.mrb[25].mxu1 }
 0x1de   :  { %v989_v53 = vpop.f32.mrb[26].mxu1 }
 0x1df   :  { %v2726_v54 = vpop.f32.mrb[27].mxu1  ;;  %v993_v55 = vsel %vm688_vm2, %v3262_v51, -inf }
 0x1e0   :  { %994 = vmax.xlane.f32.xlu1 %v993_v55 }
 0x1e4   :  { %v1087_v56 = vpop.f32.mrb[28].mxu1 }
 0x1e5   :  { %v3266_v57 = vmul.f32 0.125, %v1087_v56  ;;  %v2737_v58 = vpop.f32.mrb[29].mxu1 }
 0x1e6   :  { %v1090_v59 = vpop.f32.mrb[30].mxu1 }
 0x1e7   :  { %v2738_v60 = vpop.f32.mrb[31].mxu1  ;;  %v1094_v61 = vsel %vm688_vm2, %v3266_v57, -inf }
 0x1e8   :  { %1095 = vmax.xlane.f32.xlu0 %v1094_v61 }
 0x1ec   :  { %v1188_v62 = vpop.f32.mrb[32].mxu1 }
 0x1ed   :  { %v3270_v63 = vmul.f32 0.125, %v1188_v62  ;;  %v2749_v0 = vpop.f32.mrb[33].mxu1  ;;  %v534_v62 = vpop.f32.mrb[16].mxu0 }
 0x1ee   :  { %v1191_v1 = vpop.f32.mrb[34].mxu1  ;;  %v536_v0 = vpop.f32.mrb[17].mxu0 }
 0x1ef   :  { %v2750_v3 = vpop.f32.mrb[35].mxu1  ;;  %v1195_v4 = vsel %vm688_vm2, %v3270_v63, -inf }
 0x1f0   :  { %1196 = vmax.xlane.f32.xlu1 %v1195_v4  ;;  %v538_v3 = vpop.f32.mrb[18].mxu0 }
 0x1f4   :  { %v1295_v6 = vpop.f32.mrb[36].mxu1 }
 0x1f5   :  { %v3274_v7 = vmul.f32 0.125, %v1295_v6  ;;  %v2761_v9 = vpop.f32.mrb[37].mxu1 }
 0x1f6   :  { %v1298_v10 = vpop.f32.mrb[38].mxu1  ;;  %v3314_v9 = vpack.c.bf16 %v538_v3, %v534_v62 }
 0x1f7   :  { %v2762_v12 = vpop.f32.mrb[39].mxu1  ;;  %v1302_v13 = vsel %vm688_vm2, %v3274_v7, -inf }
 0x1f8   :  { %1303 = vmax.xlane.f32.xlu0 %v1302_v13  ;;  %v540_v12 = vpop.f32.mrb[19].mxu0 }
 0x1f9   :  { %v3320_v13 = vpack.c.bf16 %v540_v12, %v536_v0 }
 0x1fb   :  { %v807_v3 = vsel %vm704_vm3, %v3320_v13, 0 }
 0x1fc   :  { %v1407_v14 = vpop.f32.mrb[40].mxu1 }
 0x1fd   :  { %v3278_v15 = vmul.f32 0.125, %v1407_v14  ;;  %v2773_v16 = vpop.f32.mrb[41].mxu1 }
 0x1fe   :  { %v1410_v17 = vpop.f32.mrb[42].mxu1 }
 0x1ff   :  { %v2774_v18 = vpop.f32.mrb[43].mxu1  ;;  %v1414_v19 = vsel %vm688_vm2, %v3278_v15, -inf }
 0x200   :  { %1415 = vmax.xlane.f32.xlu1 %v1414_v19 }
 0x204   :  { %v1519_v20 = vpop.f32.mrb[44].mxu1 }
 0x205   :  { %v3282_v21 = vmul.f32 0.125, %v1519_v20  ;;  %v2785_v22 = vpop.f32.mrb[45].mxu1 }
 0x206   :  { %v1522_v23 = vpop.f32.mrb[46].mxu1 }
 0x207   :  { %v2786_v24 = vpop.f32.mrb[47].mxu1  ;;  %v1526_v25 = vsel %vm688_vm2, %v3282_v21, -inf }
 0x208   :  { %1527 = vmax.xlane.f32.xlu0 %v1526_v25 }
 0x20c   :  { %v1631_v26 = vpop.f32.mrb[48].mxu1 }
 0x20d   :  { %v3286_v27 = vmul.f32 0.125, %v1631_v26  ;;  %v2797_v28 = vpop.f32.mrb[49].mxu1 }
 0x20e   :  { %v1634_v29 = vpop.f32.mrb[50].mxu1 }
 0x20f   :  { %v2798_v30 = vpop.f32.mrb[51].mxu1  ;;  %v1638_v31 = vsel %vm688_vm2, %v3286_v27, -inf }
 0x210   :  { %1639 = vmax.xlane.f32.xlu1 %v1638_v31 }
 0x214   :  { %v1743_v33 = vpop.f32.mrb[52].mxu1 }
 0x215   :  { %v3290_v2 = vmul.f32 0.125, %v1743_v33  ;;  %v2809_v35 = vpop.f32.mrb[53].mxu1 }
 0x216   :  { %v1746_v36 = vpop.f32.mrb[54].mxu1 }
 0x217   :  { %v2810_v37 = vpop.f32.mrb[55].mxu1  ;;  %v1750_v38 = vsel %vm688_vm2, %v3290_v2, -inf  ;;  %v620_v36 = vpop.f32.mrb[20].mxu0 }
 0x218   :  { %1751 = vmax.xlane.f32.xlu0 %v1750_v38  ;;  %v622_v37 = vpop.f32.mrb[21].mxu0 }
 0x219   :  { %v624_v38 = vpop.f32.mrb[22].mxu0 }
 0x21c   :  { %v1855_v39 = vpop.f32.mrb[56].mxu1 }
 0x21d   :  { %v3294_v41 = vmul.f32 0.125, %v1855_v39  ;;  %v2821_v42 = vpop.f32.mrb[57].mxu1  ;;  %v626_v39 = vpop.f32.mrb[23].mxu0 }
 0x21e   :  { %v1858_v11 = vpop.f32.mrb[58].mxu1 }
 0x21f   :  { %v2822_v43 = vpop.f32.mrb[59].mxu1  ;;  %v1862_v44 = vsel %vm688_vm2, %v3294_v41, -inf  ;;  %v3346_v11 = vpack.c.bf16 %v626_v39, %v622_v37 }
 0x220   :  { %1863 = vmax.xlane.f32.xlu0 %v1862_v44 }
 0x24e   :  { %v691_v46 = vpop.xlane.xlu0 %690 }
 0x24f   :  { %v692_v47 = vsub.f32 %v3250_v34, %v691_v46 }
 0x251   :  { %v693_v48 = vmul.f32 1.442695, %v692_v47 }
 0x253   :  { %2937 = vpow2.f32 %v693_v48 }
 0x256   :  { %v793_v49 = vpop.xlane.xlu0 %792 }
 0x257   :  { %v794_v50 = vsub.f32 %v3254_v40, %v793_v49 }
 0x259   :  { %v795_v52 = vmul.f32 1.442695, %v794_v50 }
 0x25b   :  { %2939 = vpow2.f32 %v795_v52 }
 0x25d   :  { %v3300_v53 = vpop.eup %2937 }
 0x25e   :  { %v695_v54 = vsel %vm688_vm2, %v3300_v53, 0.0 }
 0x25f   :  { %696 = vadd.xlane.f32.xlu1 %v695_v54 }
 0x265   :  { %v3304_v55 = vpop.eup %2939  ;;  %v894_v56 = vpop.xlane.xlu1 %893 }
 0x266   :  { %v797_v58 = vsel %vm688_vm2, %v3304_v55, 0.0  ;;  %v895_v34 = vsub.f32 %v3258_v45, %v894_v56 }
 0x267   :  { %798 = vadd.xlane.f32.xlu1 %v797_v58 }
 0x268   :  { %v896_v59 = vmul.f32 1.442695, %v895_v34 }
 0x26a   :  { %2941 = vpow2.f32 %v896_v59 }
 0x26d   :  { %v995_v40 = vpop.xlane.xlu1 %994 }
 0x26e   :  { %v996_v60 = vsub.f32 %v3262_v51, %v995_v40  ;;  %v706_v51 = vsel %vm704_vm3, %v3314_v9, 0 }
 0x26f   :  { %2692 = vmatpush3.bf16.msra.mxu0 %v706_v51 }
 0x270   :  { %v997_v61 = vmul.f32 1.442695, %v996_v60  ;;  %2703 = vmatprep.subr.bf16.mxu0 %v3010_v32 }
 0x272   :  { %2943 = vpow2.f32 %v997_v61 }
 0x274   :  { %v3310_v1 = vpop.eup %2941 }
 0x275   :  { %v1096_v4 = vpop.xlane.xlu0 %1095  ;;  %v898_v6 = vsel %vm688_vm2, %v3310_v1, 0.0 }
 0x276   :  { %v1097_v45 = vsub.f32 %v3266_v57, %v1096_v4  ;;  %899 = vadd.xlane.f32.xlu0 %v898_v6 }
 0x278   :  { %v1098_v10 = vmul.f32 1.442695, %v1097_v45 }
 0x27a   :  { %2945 = vpow2.f32 %v1098_v10  ;;  %v908_v10 = vsel %vm704_vm3, %v3177_v5, 0 }
 0x27c   :  { %v3322_v14 = vpop.eup %2943 }
 0x27d   :  { %v1197_v16 = vpop.xlane.xlu1 %1196  ;;  %v999_v17 = vsel %vm688_vm2, %v3322_v14, 0.0 }
 0x27e   :  { %v1198_v57 = vsub.f32 %v3270_v63, %v1197_v16  ;;  %1000 = vadd.xlane.f32.xlu1 %v999_v17 }
 0x280   :  { %v1199_v18 = vmul.f32 1.442695, %v1198_v57  ;;  %v1009_v57 = vsel %vm704_vm3, %v3179_v8, 0 }
 0x282   :  { %2947 = vpow2.f32 %v1199_v18 }
 0x284   :  { %v3327_v19 = vpop.eup %2945 }
 0x285   :  { %v1304_v20 = vpop.xlane.xlu0 %1303  ;;  %v1100_v22 = vsel %vm688_vm2, %v3327_v19, 0.0 }
 0x286   :  { %v1305_v23 = vsub.f32 %v3274_v7, %v1304_v20  ;;  %1101 = vadd.xlane.f32.xlu0 %v1100_v22 }
 0x288   :  { %v1306_v24 = vmul.f32 1.442695, %v1305_v23 }
 0x28a   :  { %2949 = vpow2.f32 %v1306_v24 }
 0x28c   :  { %v3332_v25 = vpop.eup %2947 }
 0x28d   :  { %v1416_v26 = vpop.xlane.xlu1 %1415  ;;  %v1201_v63 = vsel %vm688_vm2, %v3332_v25, 0.0 }
 0x28e   :  { %v1417_v28 = vsub.f32 %v3278_v15, %v1416_v26  ;;  %1202 = vadd.xlane.f32.xlu1 %v1201_v63  ;;  %v3344_v15 = vpack.c.bf16 %v624_v38, %v620_v36  ;;  %v1427_v38 = vrot.slane %v3320_v13, 4 }
 0x290   :  { %v1418_v29 = vmul.f32 1.442695, %v1417_v28 }
 0x292   :  { %2951 = vpow2.f32 %v1418_v29 }
 0x294   :  { %v3337_v30 = vpop.eup %2949 }
 0x295   :  { %v1528_v31 = vpop.xlane.xlu0 %1527  ;;  %v1308_v7 = vsel %vm688_vm2, %v3337_v30, 0.0 }
 0x296   :  { %v1529_v33 = vsub.f32 %v3282_v21, %v1528_v31  ;;  %1309 = vadd.xlane.f32.xlu0 %v1308_v7  ;;  %v1315_v7 = vrot.slane %v3314_v9, 4 }
 0x298   :  { %v1530_v35 = vmul.f32 1.442695, %v1529_v33  ;;  %v1320_v36 = vsel %vm704_vm3, %v1315_v7, 0  ;;  %v2917_v7 = vld [vmem:[%s3610_s2 + $0xe8] sm:$0xff]  }
 0x29a   :  { %2953 = vpow2.f32 %v1530_v35 }
 0x29c   :  { %v3342_v42 = vpop.eup %2951 }
 0x29d   :  { %v1640_v43 = vpop.xlane.xlu1 %1639  ;;  %v1420_v44 = vsel %vm688_vm2, %v3342_v42, 0.0 }
 0x29e   :  { %v1641_v46 = vsub.f32 %v3286_v27, %v1640_v43  ;;  %1421 = vadd.xlane.f32.xlu1 %v1420_v44  ;;  %v1432_v43 = vsel %vm704_vm3, %v1427_v38, 0 }
 0x2a0   :  { %v1642_v21 = vmul.f32 1.442695, %v1641_v46  ;;  %v1539_v46 = vrot.slane %v3177_v5, 4 }
 0x2a2   :  { %2955 = vpow2.f32 %v1642_v21 }
 0x2a4   :  { %v3351_v47 = vpop.eup %2953 }
 0x2a5   :  { %v1752_v48 = vpop.xlane.xlu0 %1751  ;;  %v1532_v49 = vsel %vm688_vm2, %v3351_v47, 0.0 }
 0x2a6   :  { %v1753_v50 = vsub.f32 %v3290_v2, %v1752_v48  ;;  %1533 = vadd.xlane.f32.xlu0 %v1532_v49  ;;  %v1544_v48 = vsel %vm704_vm3, %v1539_v46, 0 }
 0x2a8   :  { %v1754_v52 = vmul.f32 1.442695, %v1753_v50  ;;  %v1651_v50 = vrot.slane %v3179_v8, 4 }
 0x2aa   :  { %2957 = vpow2.f32 %v1754_v52 }
 0x2ac   :  { %v3356_v54 = vpop.eup %2955 }
 0x2ad   :  { %v1864_v56 = vpop.xlane.xlu0 %1863  ;;  %v1644_v27 = vsel %vm688_vm2, %v3356_v54, 0.0 }
 0x2ae   :  { %v1865_v58 = vsub.f32 %v3294_v41, %v1864_v56  ;;  %1645 = vadd.xlane.f32.xlu1 %v1644_v27  ;;  %v1656_v56 = vsel %vm704_vm3, %v1651_v50, 0 }
 0x2b0   :  { %v1866_v34 = vmul.f32 1.442695, %v1865_v58  ;;  %v1763_v58 = vrot.slane %v3344_v15, 4 }
 0x2b2   :  { %2959 = vpow2.f32 %v1866_v34 }
 0x2b4   :  { %v3361_v59 = vpop.eup %2957 }
 0x2b5   :  { %v1756_v40 = vsel %vm688_vm2, %v3361_v59, 0.0 }
 0x2b6   :  { %1757 = vadd.xlane.f32.xlu0 %v1756_v40  ;;  %v1768_v40 = vsel %vm704_vm3, %v1763_v58, 0 }
 0x2bc   :  { %v3365_v2 = vpop.eup %2959 }
 0x2bd   :  { %v1868_v60 = vsel %vm688_vm2, %v3365_v2, 0.0 }
 0x2be   :  { %1869 = vadd.xlane.f32.xlu1 %v1868_v60 }
 0x2ec   :  { %v697_v61 = vpop.xlane.xlu1 %696 }
 0x2ed   :  { %2961 = vrcp.f32 %v697_v61  ;;  %v1875_v61 = vrot.slane %v3346_v11, 4 }
 0x2f4   :  { %v799_v62 = vpop.xlane.xlu1 %798 }
 0x2f5   :  { %2963 = vrcp.f32 %v799_v62 }
 0x2f7   :  { %v2962_v41 = vpop.eup %2961 }
 0x2f8   :  { %v699_v0 = vmul.f32 %v2962_v41, %v3300_v53 }
 0x2fa   :  { %v700_v4 = vpack.c.bf16 %v699_v0, %v699_v0 }
 0x2fc   :  { %2694 = vmatmul.mubr.msk.bf16.vlgmr.msra.gmra.mrb[24].mxu0 %vm688_vm2, %v700_v4  ;;  %v2893_v4 = vld [vmem:[%s3610_s2 + $0x50] sm:$0xff]  }
 0x2fd   :  { %2704 = vmatpush3.bf16.msra.mxu0 %v807_v3  ;;  %2705 = vmatprep.mubr.msk.bf16.mxu0 %vm3011_vm1, %v3010_v32 }
 0x2fe   :  { %2715 = vmatprep.subr.bf16.mxu0 %v3010_v32 }
 0x2ff   :  { %v2964_v6 = vpop.eup %2963 }
 0x300   :  { %v801_v45 = vmul.f32 %v2964_v6, %v3304_v55  ;;  %v2894_v6 = vld [vmem:[%s3610_s2 + $0x10] sm:$0xff]  }
 0x302   :  { %v802_v51 = vpack.c.bf16 %v801_v45, %v801_v45  ;;  %v2895_v45 = vld [vmem:[%s3610_s2 + $0x58] sm:$0xff]  }
 0x303   :  { %v900_v53 = vpop.xlane.xlu0 %899 }
 0x304   :  { %2706 = vmatmul.mubr.msk.bf16.vlgmr.msra.gmra.mrb[28].mxu0 %vm688_vm2, %v802_v51  ;;  %2965 = vrcp.f32 %v900_v53  ;;  %v2896_v51 = vld [vmem:[%s3610_s2 + $0x18] sm:$0xff]   ;;  %v2898_v53 = vld [vmem:[%s3610_s2 + $0xc0] sm:$0xff]  }
 0x305   :  { %2716 = vmatpush3.bf16.msra.mxu0 %v908_v10  ;;  %2717 = vmatprep.mubr.msk.bf16.mxu0 %vm3011_vm1, %v3010_v32  ;;  %v2897_v10 = vld [vmem:[%s3610_s2 + $0x60] sm:$0xff]  }
 0x306   :  { %2727 = vmatprep.subr.bf16.mxu0 %v3010_v32 }
 0x30b   :  { %v1001_v12 = vpop.xlane.xlu1 %1000 }
 0x30c   :  { %2967 = vrcp.f32 %v1001_v12  ;;  %v2899_v12 = vld [vmem:[%s3610_s2 + $0x20] sm:$0xff]  }
 0x30e   :  { %v2966_v16 = vpop.eup %2965 }
 0x30f   :  { %v902_v17 = vmul.f32 %v2966_v16, %v3310_v1  ;;  %v1110_v1 = vsel %vm704_vm3, %v3344_v15, 0  ;;  %v2900_v16 = vld [vmem:[%s3610_s2 + $0x80] sm:$0xff]  }
 0x311   :  { %v903_v55 = vpack.c.bf16 %v902_v17, %v902_v17  ;;  %v2901_v17 = vld [vmem:[%s3610_s2 + $0x68] sm:$0xff]  }
 0x313   :  { %v1102_v18 = vpop.xlane.xlu0 %1101  ;;  %2718 = vmatmul.mubr.msk.bf16.vlgmr.msra.gmra.mrb[32].mxu0 %vm688_vm2, %v903_v55  ;;  %v2902_v55 = vld [vmem:[%s3610_s2 + $0xc8] sm:$0xff]  }
 0x314   :  { %2969 = vrcp.f32 %v1102_v18  ;;  %2728 = vmatpush3.bf16.msra.mxu0 %v1009_v57  ;;  %2729 = vmatprep.mubr.msk.bf16.mxu0 %vm3011_vm1, %v3010_v32  ;;  %v2903_v57 = vld [vmem:[%s3610_s2 + $0x28] sm:$0xff]  }
 0x315   :  { %2739 = vmatprep.subr.bf16.mxu0 %v3010_v32  ;;  %v2904_v18 = vld [vmem:[%s3610_s2 + $0x88] sm:$0xff]  }
 0x316   :  { %v2968_v20 = vpop.eup %2967 }
 0x317   :  { %v1003_v22 = vmul.f32 %v2968_v20, %v3322_v14  ;;  %v1211_v14 = vsel %vm704_vm3, %v3346_v11, 0  ;;  %v2889_v11 = vld [vmem:[%s3610_s2 + $0x40] sm:$0xff]   ;;  %v2905_v20 = vld [vmem:[%s3610_s2 + $0x70] sm:$0xff]  }
 0x318   :  { %2619 = vmatprep.subr.bf16.mxu1 %v2889_v11 }
 0x319   :  { %v1004_v23 = vpack.c.bf16 %v1003_v22, %v1003_v22  ;;  %v2906_v22 = vld [vmem:[%s3610_s2 + $0xd0] sm:$0xff]  }
 0x31b   :  { %v1203_v24 = vpop.xlane.xlu1 %1202  ;;  %2730 = vmatmul.mubr.msk.bf16.vlgmr.msra.gmra.mrb[36].mxu0 %vm688_vm2, %v1004_v23  ;;  %v2908_v23 = vld [vmem:[%s3610_s2 + $0x90] sm:$0xff]  }
 0x31c   :  { %2971 = vrcp.f32 %v1203_v24  ;;  %2740 = vmatpush3.bf16.msra.mxu0 %v1110_v1  ;;  %2741 = vmatprep.mubr.msk.bf16.mxu0 %vm3011_vm1, %v3010_v32  ;;  %v2907_v1 = vld [vmem:[%s3610_s2 + $0x30] sm:$0xff]   ;;  %v2909_v24 = vld [vmem:[%s3610_s2 + $0x78] sm:$0xff]  }
 0x31d   :  { %2751 = vmatprep.subr.bf16.mxu0 %v3010_v32 }
 0x31e   :  { %v2970_v26 = vpop.eup %2969 }
 0x31f   :  { %v1104_v63 = vmul.f32 %v2970_v26, %v3327_v19  ;;  %v2910_v26 = vld [vmem:[%s3610_s2 + $0xd8] sm:$0xff]  }
 0x321   :  { %v1105_v28 = vpack.c.bf16 %v1104_v63, %v1104_v63  ;;  %v2911_v63 = vld [vmem:[%s3610_s2 + $0x38] sm:$0xff]  }
 0x323   :  { %v1310_v29 = vpop.xlane.xlu0 %1309  ;;  %2742 = vmatmul.mubr.msk.bf16.vlgmr.msra.gmra.mrb[40].mxu0 %vm688_vm2, %v1105_v28  ;;  %v2912_v28 = vld [vmem:[%s3610_s2 + $0x98] sm:$0xff]  }
 0x324   :  { %2973 = vrcp.f32 %v1310_v29  ;;  %2752 = vmatpush3.bf16.msra.mxu0 %v1211_v14  ;;  %2753 = vmatprep.mubr.msk.bf16.mxu0 %vm3011_vm1, %v3010_v32  ;;  %v2913_v14 = vld [vmem:[%s3610_s2 + $0xe0] sm:$0xff]  }
 0x325   :  { %2763 = vmatprep.subr.bf16.mxu0 %v3010_v32  ;;  %v2914_v29 = vld [vmem:[%s3610_s2 + $0x140] sm:$0xff]  }
 0x326   :  { %v2972_v31 = vpop.eup %2971 }
 0x327   :  { %v1205_v33 = vmul.f32 %v2972_v31, %v3332_v25  ;;  %v2915_v31 = vld [vmem:[%s3610_s2 + $0xa0] sm:$0xff]  }
 0x329   :  { %v1206_v19 = vpack.c.bf16 %v1205_v33, %v1205_v33  ;;  %v2919_v33 = vld [vmem:[%s3610_s2 + $0xa8] sm:$0xff]  }
 0x32b   :  { %v1422_v35 = vpop.xlane.xlu1 %1421  ;;  %2754 = vmatmul.mubr.msk.bf16.vlgmr.msra.gmra.mrb[44].mxu0 %vm688_vm2, %v1206_v19  ;;  %v2921_v19 = vld [vmem:[%s3610_s2 + $0xf0] sm:$0xff]  }
 0x32c   :  { %2975 = vrcp.f32 %v1422_v35  ;;  %2764 = vmatpush3.bf16.msra.mxu0 %v1320_v36  ;;  %2765 = vmatprep.mubr.msk.bf16.mxu0 %vm3011_vm1, %v3010_v32  ;;  %v2923_v35 = vld [vmem:[%s3610_s2 + $0xb0] sm:$0xff]   ;;  %v2925_v36 = vld [vmem:[%s3610_s2 + $0xf8] sm:$0xff]  }
 0x32d   :  { %2775 = vmatprep.subr.bf16.mxu0 %v3010_v32 }
 0x32e   :  { %v2974_v37 = vpop.eup %2973 }
 0x32f   :  { %v1312_v9 = vmul.f32 %v2974_v37, %v3337_v30  ;;  %v2927_v37 = vld [vmem:[%s3610_s2 + $0xb8] sm:$0xff]  }
 0x331   :  { %v1313_v39 = vpack.c.bf16 %v1312_v9, %v1312_v9 }
 0x333   :  { %v1534_v25 = vpop.xlane.xlu0 %1533  ;;  %2766 = vmatmul.mubr.msk.bf16.vlgmr.msra.gmra.mrb[48].mxu0 %vm688_vm2, %v1313_v39 }
 0x334   :  { %2977 = vrcp.f32 %v1534_v25  ;;  %2776 = vmatpush3.bf16.msra.mxu0 %v1432_v43  ;;  %2777 = vmatprep.mubr.msk.bf16.mxu0 %vm3011_vm1, %v3010_v32 }
 0x335   :  { %2787 = vmatprep.subr.bf16.mxu0 %v3010_v32 }
 0x336   :  { %v2976_v44 = vpop.eup %2975 }
 0x337   :  { %v1424_v13 = vmul.f32 %v2976_v44, %v3342_v42 }
 0x339   :  { %v1425_v21 = vpack.c.bf16 %v1424_v13, %v1424_v13 }
 0x33b   :  { %v1646_v30 = vpop.xlane.xlu1 %1645  ;;  %2778 = vmatmul.mubr.msk.bf16.vlgmr.msra.gmra.mrb[52].mxu0 %vm688_vm2, %v1425_v21 }
 0x33c   :  { %2979 = vrcp.f32 %v1646_v30  ;;  %2788 = vmatpush3.bf16.msra.mxu0 %v1544_v48  ;;  %2789 = vmatprep.mubr.msk.bf16.mxu0 %vm3011_vm1, %v3010_v32 }
 0x33d   :  { %2799 = vmatprep.subr.bf16.mxu0 %v3010_v32 }
 0x33e   :  { %v2978_v49 = vpop.eup %2977 }
 0x33f   :  { %v1536_v5 = vmul.f32 %v2978_v49, %v3351_v47 }
 0x341   :  { %v1537_v52 = vpack.c.bf16 %v1536_v5, %v1536_v5 }
 0x343   :  { %v1758_v42 = vpop.xlane.xlu0 %1757  ;;  %2790 = vmatmul.mubr.msk.bf16.vlgmr.msra.gmra.mrb[56].mxu0 %vm688_vm2, %v1537_v52 }
 0x344   :  { %2981 = vrcp.f32 %v1758_v42  ;;  %2800 = vmatpush3.bf16.msra.mxu0 %v1656_v56  ;;  %2801 = vmatprep.mubr.msk.bf16.mxu0 %vm3011_vm1, %v3010_v32 }
 0x345   :  { %2811 = vmatprep.subr.bf16.mxu0 %v3010_v32 }
 0x346   :  { %v2980_v27 = vpop.eup %2979 }
 0x347   :  { %v1648_v8 = vmul.f32 %v2980_v27, %v3356_v54  ;;  %v1880_v54 = vsel %vm704_vm3, %v1875_v61, 0 }
 0x349   :  { %v1649_v34 = vpack.c.bf16 %v1648_v8, %v1648_v8 }
 0x34b   :  { %v1870_v47 = vpop.xlane.xlu1 %1869  ;;  %2802 = vmatmul.mubr.msk.bf16.vlgmr.msra.gmra.mrb[60].mxu0 %vm688_vm2, %v1649_v34 }
 0x34c   :  { %2983 = vrcp.f32 %v1870_v47  ;;  %2812 = vmatpush3.bf16.msra.mxu0 %v1768_v40  ;;  %2813 = vmatprep.mubr.msk.bf16.mxu0 %vm3011_vm1, %v3010_v32 }
 0x34d   :  { %2823 = vmatprep.subr.bf16.mxu0 %v3010_v32 }
 0x34e   :  { %v2982_v60 = vpop.eup %2981 }
 0x34f   :  { %v1760_v15 = vmul.f32 %v2982_v60, %v3361_v59  ;;  %v2890_v59 = vld [vmem:[%s3610_s2] sm:$0xff]  }
 0x350   :  { %2620 = vmatpush3.bf16.msra.mxu1 %v2890_v59 }
 0x351   :  { %v1761_v62 = vpack.c.bf16 %v1760_v15, %v1760_v15 }
 0x353   :  { %2814 = vmatmul.mubr.msk.bf16.vlgmr.msra.gmra.mrb[64].mxu0 %vm688_vm2, %v1761_v62 }
 0x354   :  { %2824 = vmatpush3.bf16.msra.mxu0 %v1880_v54  ;;  %2825 = vmatprep.mubr.msk.bf16.mxu0 %vm3011_vm1, %v3010_v32  ;;  %v2891_v32 = vld [vmem:[%s3610_s2 + $0x48] sm:$0xff]  }
 0x355   :  { %2621 = vmatprep.subr.bf16.mxu1 %v2891_v32  ;;  %2641 = vmatprep.subr.bf16.mxu0 %v2898_v53 }
 0x356   :  { %v2984_v41 = vpop.eup %2983 }
 0x357   :  { %v1872_v0 = vmul.f32 %v2984_v41, %v3365_v2  ;;  %v2892_v2 = vld [vmem:[%s3610_s2 + $0x8] sm:$0xff]  }
 0x358   :  { %2622 = vmatpush3.bf16.msra.mxu1 %v2892_v2 }
 0x359   :  { %v1873_v3 = vpack.c.bf16 %v1872_v0, %v1872_v0  ;;  %2623 = vmatprep.subr.bf16.mxu1 %v2893_v4 }
 0x35b   :  { %2826 = vmatmul.mubr.msk.bf16.vlgmr.msra.gmra.mrb[68].mxu0 %vm688_vm2, %v1873_v3 }
 0x35c   :  { %2624 = vmatpush3.bf16.msra.mxu1 %v2894_v6  ;;  %2642 = vmatpush3.bf16.msra.mxu0 %v2900_v16 }
 0x35d   :  { %2625 = vmatprep.subr.bf16.mxu1 %v2895_v45  ;;  %2643 = vmatprep.subr.bf16.mxu0 %v2902_v55 }
 0x360   :  { %2626 = vmatpush3.bf16.msra.mxu1 %v2896_v51  ;;  %2644 = vmatpush3.bf16.msra.mxu0 %v2904_v18 }
 0x361   :  { %2627 = vmatprep.subr.bf16.mxu1 %v2897_v10  ;;  %2645 = vmatprep.subr.bf16.mxu0 %v2906_v22  ;;  %v2916_v22 = vld [vmem:[%s3610_s2 + $0x100] sm:$0xff]  }
 0x364   :  { %2628 = vmatpush3.bf16.msra.mxu1 %v2899_v12  ;;  %2646 = vmatpush3.bf16.msra.mxu0 %v2908_v23  ;;  %v2918_v23 = vld [vmem:[%s3610_s2 + $0x148] sm:$0xff]  }
 0x365   :  { %2629 = vmatprep.subr.bf16.mxu1 %v2901_v17  ;;  %2647 = vmatprep.subr.bf16.mxu0 %v2910_v26  ;;  %v2920_v26 = vld [vmem:[%s3610_s2 + $0x108] sm:$0xff]  }
 0x368   :  { %2630 = vmatpush3.bf16.msra.mxu1 %v2903_v57  ;;  %2648 = vmatpush3.bf16.msra.mxu0 %v2912_v28  ;;  %v2922_v28 = vld [vmem:[%s3610_s2 + $0x150] sm:$0xff]  }
 0x369   :  { %2631 = vmatprep.subr.bf16.mxu1 %v2905_v20  ;;  %2649 = vmatprep.subr.bf16.mxu0 %v2913_v14 }
 0x36c   :  { %2632 = vmatpush3.bf16.msra.mxu1 %v2907_v1  ;;  %2650 = vmatpush3.bf16.msra.mxu0 %v2915_v31 }
 0x36d   :  { %2633 = vmatprep.subr.bf16.mxu1 %v2909_v24  ;;  %2651 = vmatprep.subr.bf16.mxu0 %v2917_v7 }
 0x370   :  { %2634 = vmatpush3.bf16.msra.mxu1 %v2911_v63  ;;  %2652 = vmatpush3.bf16.msra.mxu0 %v2919_v33 }
 0x371   :  { %2663 = vmatprep.subr.bf16.mxu1 %v2914_v29  ;;  %2653 = vmatprep.subr.bf16.mxu0 %v2921_v19  ;;  %v2924_v19 = vld [vmem:[%s3610_s2 + $0x110] sm:$0xff]  }
 0x374   :  { %2654 = vmatpush3.bf16.msra.mxu0 %v2923_v35  ;;  %v2926_v35 = vld [vmem:[%s3610_s2 + $0x158] sm:$0xff]  }
 0x375   :  { %2655 = vmatprep.subr.bf16.mxu0 %v2925_v36  ;;  %v2928_v36 = vld [vmem:[%s3610_s2 + $0x118] sm:$0xff]  }
 0x378   :  { %2656 = vmatpush3.bf16.msra.mxu0 %v2927_v37 }
 0x3cf   :  { %v742_v38 = vpop.f32.mrb[24].mxu0 }
 0x3d0   :  { %v748_v9 = vpack.c.bf16 %v742_v38, %v742_v38  ;;  %v2695_v39 = vpop.f32.mrb[25].mxu0  ;;  %v2929_v38 = vld [vmem:[%s3610_s2 + $0x160] sm:$0xff]  }
 0x3d1   :  { %v745_v25 = vpop.f32.mrb[26].mxu0 }
 0x3d2   :  { %749 = vst [vmem:[#allocation2] sm:$0xf] %v748_v9  ;;  %v2696_v43 = vpop.f32.mrb[27].mxu0 }
 0x3d7   :  { %v843_v44 = vpop.f32.mrb[28].mxu0 }
 0x3d8   :  { %v849_v46 = vpack.c.bf16 %v843_v44, %v843_v44  ;;  %v2707_v13 = vpop.f32.mrb[29].mxu0 }
 0x3d9   :  { %v846_v21 = vpop.f32.mrb[30].mxu0 }
 0x3da   :  { %850 = vst [vmem:[#allocation2 + $0x8] sm:$0xf] %v849_v46  ;;  %v2708_v30 = vpop.f32.mrb[31].mxu0  ;;  %v2930_v46 = vld [vmem:[%s3610_s2 + $0x120] sm:$0xff]   ;;  %v2931_v21 = vld [vmem:[%s3610_s2 + $0x168] sm:$0xff]  }
 0x3e6   :  { %v944_v48 = vpop.f32.mrb[32].mxu0 }
 0x3e7   :  { %v950_v49 = vpack.c.bf16 %v944_v48, %v944_v48  ;;  %v2719_v50 = vpop.f32.mrb[33].mxu0  ;;  %v2932_v48 = vld [vmem:[%s3610_s2 + $0x128] sm:$0xff]  }
 0x3e8   :  { %v947_v5 = vpop.f32.mrb[34].mxu0  ;;  %v2933_v50 = vld [vmem:[%s3610_s2 + $0x170] sm:$0xff]  }
 0x3e9   :  { %951 = vst [vmem:[#allocation2 + $0x10] sm:$0xf] %v950_v49  ;;  %v2720_v52 = vpop.f32.mrb[35].mxu0 }
 0x3ee   :  { %v1045_v42 = vpop.f32.mrb[36].mxu0 }
 0x3ef   :  { %v1051_v56 = vpack.c.bf16 %v1045_v42, %v1045_v42  ;;  %v2731_v27 = vpop.f32.mrb[37].mxu0 }
 0x3f0   :  { %v1048_v58 = vpop.f32.mrb[38].mxu0 }
 0x3f1   :  { %1052 = vst [vmem:[#allocation2 + $0x18] sm:$0xf] %v1051_v56  ;;  %v2732_v8 = vpop.f32.mrb[39].mxu0  ;;  %v2934_v58 = vld [vmem:[%s3610_s2 + $0x130] sm:$0xff]  }
 0x3f2   :  { %v2935_v8 = vld [vmem:[%s3610_s2 + $0x178] sm:$0xff]  }
 0x3f6   :  { %v1146_v34 = vpop.f32.mrb[40].mxu0 }
 0x3f7   :  { %v1152_v47 = vpack.c.bf16 %v1146_v34, %v1146_v34  ;;  %v2743_v40 = vpop.f32.mrb[41].mxu0  ;;  %v2936_v34 = vld [vmem:[%s3610_s2 + $0x138] sm:$0xff]   ;;  %s3012_s2 = smov [#allocation3]  }
 0x3f8   :  { %v1149_v60 = vpop.f32.mrb[42].mxu0  ;;  %s2454_s23 = sshll.u32 %s3012_s2, 4  ;;  %s2455_s23 = int_to_ptr.vmem [resolvable:$true] %s2454_s23 }
 0x3f9   :  { %1153 = vst [vmem:[#allocation2 + $0x20] sm:$0xf] %v1152_v47  ;;  %v2744_v61 = vpop.f32.mrb[43].mxu0  ;;  %p2990_p1 = scmp.lt.s32.totalorder %s2455_s23, %s2455_s23 }
 0x3fe   :  { %v1247_v15 = vpop.f32.mrb[44].mxu0 }
 0x3ff   :  { %v1253_v62 = vpack.c.bf16 %v1247_v15, %v1247_v15  ;;  %v2755_v54 = vpop.f32.mrb[45].mxu0 }
 0x400   :  { %v1250_v41 = vpop.f32.mrb[46].mxu0 }
 0x401   :  { %1254 = vst [vmem:[#allocation2 + $0x28] sm:$0xf] %v1253_v62  ;;  %v2756_v0 = vpop.f32.mrb[47].mxu0 }
 0x402   :  { %v2522_v0 = vld [vmem:[%s3611_s3] ss:$0 sm:$0xff]  ;;  %s2985_s3 = scalar_lea.vmem %s2455_s23, 256 }
 0x403   :  { %p2986_p0 = scmp.ne.s32.totalorder %s2455_s23, %s2985_s3  ;;  %p2991_p2 = scmp.lt.s32.totalorder %s2985_s3, %s2985_s3 }
 0x405   :  { %p2992_p3 = por %p2991_p2, %p2990_p1 }
 0x406   :  { %v1356_v3 = vpop.f32.mrb[48].mxu0 }
 0x407   :  { %v1362_v11 = vpack.c.bf16 %v1356_v3, %v1356_v3  ;;  %v2767_v59 = vpop.f32.mrb[49].mxu0  ;;  %p2993_p4 = pnand %p2992_p3, %p2986_p0 }
 0x408   :  { %v1359_v32 = vpop.f32.mrb[50].mxu0 }
 0x409   :  { %v1364_v2 = vrot.slane %v1362_v11, 4  ;;  %v2768_v4 = vpop.f32.mrb[51].mxu0 }
 0x40b   :  { %1366 = vst [vmem:[#allocation2] sm:$0xf0] %v1364_v2 }
 0x40e   :  { %v1468_v6 = vpop.f32.mrb[52].mxu0 }
 0x40f   :  { %v1474_v45 = vpack.c.bf16 %v1468_v6, %v1468_v6  ;;  %v2779_v51 = vpop.f32.mrb[53].mxu0 }
 0x410   :  { %v1471_v10 = vpop.f32.mrb[54].mxu0 }
 0x411   :  { %v1476_v53 = vrot.slane %v1474_v45, 4  ;;  %v2780_v12 = vpop.f32.mrb[55].mxu0 }
 0x412   :  { %v1927_v24 = vld [vmem:[#allocation2] sm:$0xff] }
 0x413   :  { %1478 = vst [vmem:[#allocation2 + $0x8] sm:$0xf0] %v1476_v53 }
 0x416   :  { %v1580_v16 = vpop.f32.mrb[56].mxu0 }
 0x417   :  { %v1586_v17 = vpack.c.bf16 %v1580_v16, %v1580_v16  ;;  %v2791_v55 = vpop.f32.mrb[57].mxu0 }
 0x418   :  { %v1583_v57 = vpop.f32.mrb[58].mxu0 }
 0x419   :  { %v1588_v18 = vrot.slane %v1586_v17, 4  ;;  %v2792_v20 = vpop.f32.mrb[59].mxu0 }
 0x41a   :  { %v1928_v1 = vld [vmem:[#allocation2 + $0x8] sm:$0xff] }
 0x41b   :  { %1590 = vst [vmem:[#allocation2 + $0x10] sm:$0xf0] %v1588_v18  ;;  %2356 = vmatprep.mubr.bf16.mxu1 %v1928_v1 }
 0x41c   :  { %2357 = vmatmul.mubr.bf16.vlgmr.msra.gmra.mrb[60].mxu1 %v1927_v24 }
 0x41d   :  { %2664 = vmatpush3.bf16.msra.mxu1 %v2916_v22 }
 0x41e   :  { %v1692_v63 = vpop.f32.mrb[60].mxu0  ;;  %2665 = vmatprep.subr.bf16.mxu1 %v2918_v23 }
 0x41f   :  { %v1698_v14 = vpack.c.bf16 %v1692_v63, %v1692_v63  ;;  %v2803_v29 = vpop.f32.mrb[61].mxu0 }
 0x420   :  { %v1695_v31 = vpop.f32.mrb[62].mxu0 }
 0x421   :  { %v1700_v7 = vrot.slane %v1698_v14, 4  ;;  %v2804_v33 = vpop.f32.mrb[63].mxu0  ;;  %2666 = vmatpush3.bf16.msra.mxu1 %v2920_v26 }
 0x422   :  { %2667 = vmatprep.subr.bf16.mxu1 %v2922_v28  ;;  %v1929_v30 = vld [vmem:[#allocation2 + $0x10] sm:$0xff] }
 0x423   :  { %1702 = vst [vmem:[#allocation2 + $0x18] sm:$0xf0] %v1700_v7 }
 0x425   :  { %2668 = vmatpush3.bf16.msra.mxu1 %v2924_v19 }
 0x426   :  { %v1804_v37 = vpop.f32.mrb[64].mxu0  ;;  %2669 = vmatprep.subr.bf16.mxu1 %v2926_v35 }
 0x427   :  { %v1810_v9 = vpack.c.bf16 %v1804_v37, %v1804_v37  ;;  %v2815_v39 = vpop.f32.mrb[65].mxu0 }
 0x428   :  { %v1807_v25 = vpop.f32.mrb[66].mxu0 }
 0x429   :  { %v1812_v43 = vrot.slane %v1810_v9, 4  ;;  %v2816_v44 = vpop.f32.mrb[67].mxu0  ;;  %2670 = vmatpush3.bf16.msra.mxu1 %v2928_v36 }
 0x42a   :  { %v1930_v13 = vld [vmem:[#allocation2 + $0x18] sm:$0xff]  ;;  %2671 = vmatprep.subr.bf16.mxu1 %v2929_v38 }
 0x42b   :  { %1814 = vst [vmem:[#allocation2 + $0x20] sm:$0xf0] %v1812_v43  ;;  %2397 = vmatprep.mubr.bf16.mxu0 %v1930_v13 }
 0x42c   :  { %2398 = vmatmul.mubr.bf16.vlgmr.msra.gmra.mrb[72].mxu0 %v1929_v30 }
 0x42d   :  { %2672 = vmatpush3.bf16.msra.mxu1 %v2930_v46 }
 0x42e   :  { %v1916_v49 = vpop.f32.mrb[68].mxu0  ;;  %2673 = vmatprep.subr.bf16.mxu1 %v2931_v21 }
 0x42f   :  { %v1922_v5 = vpack.c.bf16 %v1916_v49, %v1916_v49  ;;  %v2827_v52 = vpop.f32.mrb[69].mxu0 }
 0x430   :  { %v1919_v42 = vpop.f32.mrb[70].mxu0 }
 0x431   :  { %v1924_v56 = vrot.slane %v1922_v5, 4  ;;  %v2828_v27 = vpop.f32.mrb[71].mxu0  ;;  %2674 = vmatpush3.bf16.msra.mxu1 %v2932_v48 }
 0x432   :  { %2675 = vmatprep.subr.bf16.mxu1 %v2933_v50  ;;  %v1931_v40 = vld [vmem:[#allocation2 + $0x20] sm:$0xff] }
 0x433   :  { %1926 = vst [vmem:[#allocation2 + $0x28] sm:$0xf0] %v1924_v56 }
 0x435   :  { %2676 = vmatpush3.bf16.msra.mxu1 %v2934_v58 }
 0x436   :  { %2677 = vmatprep.subr.bf16.mxu1 %v2935_v8 }
 0x439   :  { %2678 = vmatpush3.bf16.msra.mxu1 %v2936_v34 }
 0x43a   :  { %v1932_v47 = vld [vmem:[#allocation2 + $0x28] sm:$0xff] }
 0x43b   :  { %2438 = vmatprep.mubr.bf16.mxu1 %v1932_v47 }
 0x43c   :  { %2439 = vmatmul.mubr.bf16.vlgmr.msra.gmra.mrb[64].mxu1 %v1931_v40 }
 0x4ef   :  { %v2635_v60 = vpop.f32.mrb[60].mxu1 }
 0x4f0   :  { %v2636_v61 = vpop.f32.mrb[61].mxu1 }
 0x4f1   :  { %v2637_v15 = vadd.f32 %v2636_v61, %v2635_v60  ;;  %v2638_v62 = vpop.f32.mrb[62].mxu1 }
 0x4f2   :  { %v2639_v54 = vpop.f32.mrb[63].mxu1 }
 0x4f3   :  { %v2640_v41 = vadd.f32 %v2639_v54, %v2638_v62  ;;  %v2359_v59 = vadd.f32 %v2637_v15, %v2522_v0 }
 0x4f5   :  { %v2362_v6 = vadd.f32 %v2640_v41, %v2522_v0 }
 0x4ff   :  { %v2657_v3 = vpop.f32.mrb[72].mxu0 }
 0x500   :  { %v2658_v11 = vpop.f32.mrb[73].mxu0 }
 0x501   :  { %v2659_v32 = vadd.f32 %v2658_v11, %v2657_v3  ;;  %v2660_v2 = vpop.f32.mrb[74].mxu0 }
 0x502   :  { %v2661_v4 = vpop.f32.mrb[75].mxu0 }
 0x503   :  { %v2400_v45 = vadd.f32 %v2659_v32, %v2359_v59  ;;  %v2662_v51 = vadd.f32 %v2661_v4, %v2660_v2 }
 0x505   :  { %v2403_v10 = vadd.f32 %v2662_v51, %v2362_v6 }
 0x50f   :  { %v2679_v53 = vpop.f32.mrb[64].mxu1 }
 0x510   :  { %v2680_v12 = vpop.f32.mrb[65].mxu1 }
 0x511   :  { %v2681_v16 = vadd.f32 %v2680_v12, %v2679_v53  ;;  %v2682_v17 = vpop.f32.mrb[66].mxu1 }
 0x512   :  { %v2683_v55 = vpop.f32.mrb[67].mxu1 }
 0x513   :  { %v2441_v57 = vadd.f32 %v2681_v16, %v2400_v45  ;;  %v2684_v18 = vadd.f32 %v2683_v55, %v2682_v17 }
 0x515   :  { %2447 = vst.msk [vmem:[#allocation3] sm:$0xff] %vm238_vm0, %v2441_v57  ;;  %v2444_v20 = vadd.f32 %v2684_v18, %v2403_v10 }
 0x517   :  { %2448 = vst.msk [vmem:[#allocation3 + $0x8] sm:$0xff] %vm238_vm0, %v2444_v20 }
 0x518   :  { %2996 = shalt.err (!%p2993_p4)
}
 0x519   :  { %s2997_s26 = scalar_lea.hbm %s3612_s4, 256 }
 0x51a   :  { %p2998_p5 = scmp.ne.s32.totalorder %s3612_s4, %s2997_s26  ;;  %p3001_p6 = scmp.lt.u32.totalorder %s2997_s26, %s3612_s4 }
 0x51c   :  { %p3003_p7 = pnand %p3001_p6, %p2998_p5 }
 0x51e   :  { %3006 = shalt.err (!%p3003_p7)
}
 0x51f   :  { %s3013_s5 = smov 128   ;;  %s3014_s6 = smov 8  }
 0x520   :  { %2460 = dma.vmem_to_hbm [thread:$0]  %s2455_s23, 256, %s3612_s4, [#allocation4], %s3013_s5, %s3013_s5, %s3014_s6  }
 0x521   :  { %3007 = dma.done.wait [#allocation4], 256  }
 0x522   :  { %3008 = vsyncadd [#allocation4], 4294967040 }
 0x523   :  { %2464 = vsyncpa [#allocation4], 1 }

</bundles_post_ra>
